<compile_context>
chip_gen: v6e
topology: v6e:2x2x1
jax: 0.10.0
libtpu: 0.0.40
codegen_flags: <defaults>
</compile_context>

<pallas_src>
import functools

import jax
import jax.numpy as jnp
from jax import lax
from jax.experimental import pallas as pl
from jax.experimental.pallas import tpu as pltpu


def _dsconv_kernel(has_halo, x_ref, *rest):
    """Fused depthwise 3x3 (pad=1) + pointwise 1x1 conv on one (batch, row-tile).

    has_halo=False:
      x_ref : (1, Cin, H, W) full-height tile; all padding synthesized in-kernel.
      rest  : wd, bd, wp, bp (SMEM), o_ref (1, Cout, H, W)
    has_halo=True:
      x_ref : (1, Cin, TH, W) core rows
      rest  : top_ref (1,Cin,HALO,W)  last row = row above tile (clamped)
              bot_ref (1,Cin,HALO,W)  first row = row below tile (clamped)
              wd, bd, wp, bp (SMEM), o_ref (1, Cout, TH, W)
    wd: (Cin*9,) flat [c,kh,kw]; bd: (Cin,); wp: (Cout*Cin,) flat [o,c]; bp: (Cout,)
    """
    if has_halo:
        top_ref, bot_ref, wd_ref, bd_ref, wp_ref, bp_ref, o_ref = rest
    else:
        top_ref = bot_ref = None
        wd_ref, bd_ref, wp_ref, bp_ref, o_ref = rest

    cin = x_ref.shape[1]
    th = x_ref.shape[2]
    w = x_ref.shape[3]
    cout = o_ref.shape[1]

    if has_halo:
        halo = top_ref.shape[2]
        h = pl.program_id(1)
        nh = pl.num_programs(1)
        # Zero the halo rows when this tile touches the top/bottom image edge
        # (that is where the conv's zero padding lives).
        top_scale = jnp.where(h == 0, 0.0, 1.0)
        bot_scale = jnp.where(h == nh - 1, 0.0, 1.0)

    # hoisted, reused by all channels
    zero_col = jnp.zeros((th + 2, 1), jnp.float32)
    zero_row = jnp.zeros((1, w), jnp.float32)

    # ---- depthwise 3x3 (per input channel, VPU shifted-window MAC in f32) ----
    dw = []
    for c in range(cin):
        core = x_ref[0, c, :, :].astype(jnp.float32)                   # (TH, W)
        if has_halo:
            top = top_ref[0, c, halo - 1:halo, :].astype(jnp.float32) * top_scale
            bot = bot_ref[0, c, 0:1, :].astype(jnp.float32) * bot_scale
        else:
            top = zero_row
            bot = zero_row
        z = jnp.concatenate([top, core, bot], axis=0)                  # (TH+2, W)
        # column-shifted views with explicit zero columns (W-direction padding)
        zl = jnp.concatenate([zero_col, z[:, :w - 1]], axis=1)  # col j -> x[:, j-1]
        zr = jnp.concatenate([z[:, 1:], zero_col], axis=1)      # col j -> x[:, j+1]
        planes = (zl, z, zr)

        acc = None
        for kh in range(3):
            for kw in range(3):
                term = planes[kw][kh:kh + th, :] * wd_ref[c * 9 + kh * 3 + kw]
                acc = term if acc is None else acc + term
        dw.append(acc + bd_ref[c])

    # ---- pointwise 1x1 as unrolled VPU MAC over Cin (channels too small for MXU) ----
    for o in range(cout):
        acc = dw[0] * wp_ref[o * cin]
        for c in range(1, cin):
            acc = acc + dw[c] * wp_ref[o * cin + c]
        o_ref[0, o, :, :] = (acc + bp_ref[o]).astype(o_ref.dtype)


def _pick_row_tile(H, W, Cin, Cout, itemsize):
    """Largest multiple-of-8 divisor of H whose double-buffered working set fits a
    modest per-step VMEM budget (sized so it is safe on v7x's 64 MiB VMEM)."""
    if H % 8 != 0:
        return H, H  # fallback: one full-height block (block == full dim is allowed)
    halo = 8
    budget = 6 * 1024 * 1024
    best = 8
    for th in range(8, H + 1, 8):
        if H % th:
            continue
        need = (2 * (Cin * th * W + 2 * Cin * halo * W + Cout * th * W) * itemsize
                + (Cin + 4) * th * W * 4)
        if need <= budget:
            best = th
    return best, halo


@jax.jit
def depthwise_separable_conv(x, wd, bd, wp, bp):
    """x: (N, Cin, H, W) NCHW.  wd: (Cin,1,3,3)  bd: (Cin,)  wp: (Cout,Cin,1,1)  bp: (Cout,).

    Same parameter shapes as the PyTorch module. Returns (N, Cout, H, W)."""
    N, Cin, H, W = x.shape
    Cout = wp.shape[0]

    TH, HALO = _pick_row_tile(H, W, Cin, Cout, x.dtype.itemsize)
    HB = H // TH                 # number of row tiles
    has_halo = HB > 1

    wd_flat = wd.reshape(Cin * 9).astype(jnp.float32)
    bd_f = bd.reshape(Cin).astype(jnp.float32)
    wp_flat = wp.reshape(Cout * Cin).astype(jnp.float32)
    bp_f = bp.reshape(Cout).astype(jnp.float32)

    smem = pl.BlockSpec(memory_space=pltpu.MemorySpace.SMEM)

    # explicit scoped-VMEM limit: enough for double-buffered tiles + f32 temps,
    # clamped to 48 MiB so it is valid on v7x (64 MiB) as well as v5e/v6e (128 MiB).
    isz = x.dtype.itemsize
    halo_elems = (2 * Cin * HALO * W) if has_halo else 0
    need = (2 * (Cin * TH * W + halo_elems + Cout * TH * W) * isz
            + (Cin + 4) * TH * W * 4)
    vmem_limit = int(min(max(2 * need, 32 * 1024 * 1024), 48 * 1024 * 1024))

    if not has_halo:
        # Whole height in one tile: no halo fetches, grid over batch only.
        grid = (N,)
        in_specs = [
            pl.BlockSpec((1, Cin, H, W), lambda n: (n, 0, 0, 0)),
            smem, smem, smem, smem,
        ]
        out_specs = pl.BlockSpec((1, Cout, H, W), lambda n: (n, 0, 0, 0))
        dims = ("parallel",)
        args = (x, wd_flat, bd_f, wp_flat, bp_f)
    else:
        HBLK = H // HALO         # number of HALO-row blocks along H
        K = TH // HALO           # HALO-row blocks per row tile
        grid = (N, HB)
        in_specs = [
            # core rows of the tile
            pl.BlockSpec((1, Cin, TH, W), lambda n, h: (n, 0, h, 0)),
            # HALO-row block containing the row just above the tile (clamped at top)
            pl.BlockSpec((1, Cin, HALO, W),
                         lambda n, h: (n, 0, jnp.maximum(h * K - 1, 0), 0)),
            # HALO-row block containing the row just below the tile (clamped at bottom)
            pl.BlockSpec((1, Cin, HALO, W),
                         lambda n, h: (n, 0, jnp.minimum((h + 1) * K, HBLK - 1), 0)),
            smem, smem, smem, smem,
        ]
        out_specs = pl.BlockSpec((1, Cout, TH, W), lambda n, h: (n, 0, h, 0))
        dims = ("parallel", "parallel")
        args = (x, x, x, wd_flat, bd_f, wp_flat, bp_f)

    out = pl.pallas_call(
        functools.partial(_dsconv_kernel, has_halo),
        out_shape=jax.ShapeDtypeStruct((N, Cout, H, W), x.dtype),
        grid_spec=pltpu.PrefetchScalarGridSpec(
            num_scalar_prefetch=0,
            grid=grid,
            in_specs=in_specs,
            out_specs=out_specs,
        ),
        compiler_params=pltpu.CompilerParams(
            dimension_semantics=dims,
            vmem_limit_bytes=vmem_limit),
    )(*args)
    return out


def _reference(x, wd, bd, wp, bp):
    """Pure-JAX reference matching the PyTorch module exactly (NCHW / OIHW)."""
    Cin = x.shape[1]
    Cout = wp.shape[0]
    dwo = lax.conv_general_dilated(
        x, wd, window_strides=(1, 1), padding=((1, 1), (1, 1)),
        dimension_numbers=("NCHW", "OIHW", "NCHW"), feature_group_count=Cin)
    dwo = dwo + bd.reshape(1, Cin, 1, 1)
    out = lax.conv_general_dilated(
        dwo, wp, window_strides=(1, 1), padding=((0, 0), (0, 0)),
        dimension_numbers=("NCHW", "OIHW", "NCHW"))
    return out + bp.reshape(1, Cout, 1, 1)


if __name__ == "__main__":
    # Small shapes consistent with the module's forward: NCHW input.
    N, Cin, H, W = 2, 4, 16, 16
    Cout = 8

    key = jax.random.PRNGKey(0)
    kx, kwd, kbd, kwp, kbp = jax.random.split(key, 5)

    x = jax.random.normal(kx, (N, Cin, H, W), dtype=jnp.float32)

    # Parameter shapes exactly as in nn.Conv2d:
    #   depthwise: weight (Cin, 1, 3, 3), bias (Cin,)
    #   pointwise: weight (Cout, Cin, 1, 1), bias (Cout,)
    wd = jax.random.normal(kwd, (Cin, 1, 3, 3), dtype=jnp.float32) * 0.1
    bd = jax.random.normal(kbd, (Cin,), dtype=jnp.float32) * 0.1
    wp = jax.random.normal(kwp, (Cout, Cin, 1, 1), dtype=jnp.float32) * 0.1
    bp = jax.random.normal(kbp, (Cout,), dtype=jnp.float32) * 0.1

    out = jax.block_until_ready(depthwise_separable_conv(x, wd, bd, wp, bp))

    ref = jax.block_until_ready(_reference(x, wd, bd, wp, bp))
    assert out.shape == (N, Cout, H, W), out.shape
    assert jnp.allclose(out, ref, atol=1e-4, rtol=1e-4), "mismatch vs reference"

    print("KERNEL_OK")
</pallas_src>

<mosaic_0001>
module attributes {stable_mosaic.version = 11 : i64} {
  func.func @_dsconv_kernel(%arg0: i32, %arg1: memref<1x4x16x16xf32, #tpu.memory_space<vmem>>, %arg2: memref<36xf32, #tpu.memory_space<smem>>, %arg3: memref<4xf32, #tpu.memory_space<smem>>, %arg4: memref<32xf32, #tpu.memory_space<smem>>, %arg5: memref<8xf32, #tpu.memory_space<smem>>, %arg6: memref<1x8x16x16xf32, #tpu.memory_space<vmem>>) attributes {dimension_semantics = [#tpu.dimension_semantics<parallel>], iteration_bounds = array<i64: 2>, scalar_prefetch = 0 : i64, scratch_operands = 0 : i64, tpu.core_type = #tpu.core_type<tc>, window_params = [{transform_indices = @transform_0, window_bounds = array<i64: 1, 4, 16, 16>}, {transform_indices = @transform_1, window_bounds = array<i64: 36>}, {transform_indices = @transform_2, window_bounds = array<i64: 4>}, {transform_indices = @transform_3, window_bounds = array<i64: 32>}, {transform_indices = @transform_4, window_bounds = array<i64: 8>}, {transform_indices = @transform_5, window_bounds = array<i64: 1, 8, 16, 16>}]} {
    %cst = arith.constant 0.000000e+00 : f32
    %0 = vector.broadcast %cst : f32 to vector<18x1xf32>
    %cst_0 = arith.constant 0.000000e+00 : f32
    %1 = vector.broadcast %cst_0 : f32 to vector<1x16xf32>
    %c0 = arith.constant 0 : index
    %c0_1 = arith.constant 0 : index
    %c0_2 = arith.constant 0 : index
    %c0_3 = arith.constant 0 : index
    %2 = vector.load %arg1[%c0, %c0_1, %c0_2, %c0_3] : memref<1x4x16x16xf32, #tpu.memory_space<vmem>>, vector<1x1x16x16xf32>
    %3 = vector.shape_cast %2 : vector<1x1x16x16xf32> to vector<16x16xf32>
    %4 = tpu.concatenate %1, %3, %1 in 0 : vector<1x16xf32>, vector<16x16xf32>, vector<1x16xf32> -> vector<18x16xf32>
    %5 = vector.extract_strided_slice %4 {offsets = [0, 0], sizes = [18, 15], strides = [1, 1]} : vector<18x16xf32> to vector<18x15xf32>
    %6 = tpu.concatenate %0, %5 in 1 : vector<18x1xf32>, vector<18x15xf32> -> vector<18x16xf32>
    %7 = vector.extract_strided_slice %4 {offsets = [0, 1], sizes = [18, 15], strides = [1, 1]} : vector<18x16xf32> to vector<18x15xf32>
    %8 = tpu.concatenate %7, %0 in 1 : vector<18x15xf32>, vector<18x1xf32> -> vector<18x16xf32>
    %9 = vector.extract_strided_slice %6 {offsets = [0, 0], sizes = [16, 16], strides = [1, 1]} : vector<18x16xf32> to vector<16x16xf32>
    %c0_4 = arith.constant 0 : index
    %10 = memref.load %arg2[%c0_4] : memref<36xf32, #tpu.memory_space<smem>>
    %11 = vector.broadcast %10 : f32 to vector<16x16xf32>
    %12 = arith.mulf %9, %11 : vector<16x16xf32>
    %13 = vector.extract_strided_slice %4 {offsets = [0, 0], sizes = [16, 16], strides = [1, 1]} : vector<18x16xf32> to vector<16x16xf32>
    %c1 = arith.constant 1 : index
    %14 = memref.load %arg2[%c1] : memref<36xf32, #tpu.memory_space<smem>>
    %15 = vector.broadcast %14 : f32 to vector<16x16xf32>
    %16 = arith.mulf %13, %15 : vector<16x16xf32>
    %17 = arith.addf %12, %16 : vector<16x16xf32>
    %18 = vector.extract_strided_slice %8 {offsets = [0, 0], sizes = [16, 16], strides = [1, 1]} : vector<18x16xf32> to vector<16x16xf32>
    %c2 = arith.constant 2 : index
    %19 = memref.load %arg2[%c2] : memref<36xf32, #tpu.memory_space<smem>>
    %20 = vector.broadcast %19 : f32 to vector<16x16xf32>
    %21 = arith.mulf %18, %20 : vector<16x16xf32>
    %22 = arith.addf %17, %21 : vector<16x16xf32>
    %23 = vector.extract_strided_slice %6 {offsets = [1, 0], sizes = [16, 16], strides = [1, 1]} : vector<18x16xf32> to vector<16x16xf32>
    %c3 = arith.constant 3 : index
    %24 = memref.load %arg2[%c3] : memref<36xf32, #tpu.memory_space<smem>>
    %25 = vector.broadcast %24 : f32 to vector<16x16xf32>
    %26 = arith.mulf %23, %25 : vector<16x16xf32>
    %27 = arith.addf %22, %26 : vector<16x16xf32>
    %28 = vector.extract_strided_slice %4 {offsets = [1, 0], sizes = [16, 16], strides = [1, 1]} : vector<18x16xf32> to vector<16x16xf32>
    %c4 = arith.constant 4 : index
    %29 = memref.load %arg2[%c4] : memref<36xf32, #tpu.memory_space<smem>>
    %30 = vector.broadcast %29 : f32 to vector<16x16xf32>
    %31 = arith.mulf %28, %30 : vector<16x16xf32>
    %32 = arith.addf %27, %31 : vector<16x16xf32>
    %33 = vector.extract_strided_slice %8 {offsets = [1, 0], sizes = [16, 16], strides = [1, 1]} : vector<18x16xf32> to vector<16x16xf32>
    %c5 = arith.constant 5 : index
    %34 = memref.load %arg2[%c5] : memref<36xf32, #tpu.memory_space<smem>>
    %35 = vector.broadcast %34 : f32 to vector<16x16xf32>
    %36 = arith.mulf %33, %35 : vector<16x16xf32>
    %37 = arith.addf %32, %36 : vector<16x16xf32>
    %38 = vector.extract_strided_slice %6 {offsets = [2, 0], sizes = [16, 16], strides = [1, 1]} : vector<18x16xf32> to vector<16x16xf32>
    %c6 = arith.constant 6 : index
    %39 = memref.load %arg2[%c6] : memref<36xf32, #tpu.memory_space<smem>>
    %40 = vector.broadcast %39 : f32 to vector<16x16xf32>
    %41 = arith.mulf %38, %40 : vector<16x16xf32>
    %42 = arith.addf %37, %41 : vector<16x16xf32>
    %43 = vector.extract_strided_slice %4 {offsets = [2, 0], sizes = [16, 16], strides = [1, 1]} : vector<18x16xf32> to vector<16x16xf32>
    %c7 = arith.constant 7 : index
    %44 = memref.load %arg2[%c7] : memref<36xf32, #tpu.memory_space<smem>>
    %45 = vector.broadcast %44 : f32 to vector<16x16xf32>
    %46 = arith.mulf %43, %45 : vector<16x16xf32>
    %47 = arith.addf %42, %46 : vector<16x16xf32>
    %48 = vector.extract_strided_slice %8 {offsets = [2, 0], sizes = [16, 16], strides = [1, 1]} : vector<18x16xf32> to vector<16x16xf32>
    %c8 = arith.constant 8 : index
    %49 = memref.load %arg2[%c8] : memref<36xf32, #tpu.memory_space<smem>>
    %50 = vector.broadcast %49 : f32 to vector<16x16xf32>
    %51 = arith.mulf %48, %50 : vector<16x16xf32>
    %52 = arith.addf %47, %51 : vector<16x16xf32>
    %c0_5 = arith.constant 0 : index
    %53 = memref.load %arg3[%c0_5] : memref<4xf32, #tpu.memory_space<smem>>
    %54 = vector.broadcast %53 : f32 to vector<16x16xf32>
    %55 = arith.addf %52, %54 : vector<16x16xf32>
    %c0_6 = arith.constant 0 : index
    %c1_7 = arith.constant 1 : index
    %c0_8 = arith.constant 0 : index
    %c0_9 = arith.constant 0 : index
    %56 = vector.load %arg1[%c0_6, %c1_7, %c0_8, %c0_9] : memref<1x4x16x16xf32, #tpu.memory_space<vmem>>, vector<1x1x16x16xf32>
    %57 = vector.shape_cast %56 : vector<1x1x16x16xf32> to vector<16x16xf32>
    %58 = tpu.concatenate %1, %57, %1 in 0 : vector<1x16xf32>, vector<16x16xf32>, vector<1x16xf32> -> vector<18x16xf32>
    %59 = vector.extract_strided_slice %58 {offsets = [0, 0], sizes = [18, 15], strides = [1, 1]} : vector<18x16xf32> to vector<18x15xf32>
    %60 = tpu.concatenate %0, %59 in 1 : vector<18x1xf32>, vector<18x15xf32> -> vector<18x16xf32>
    %61 = vector.extract_strided_slice %58 {offsets = [0, 1], sizes = [18, 15], strides = [1, 1]} : vector<18x16xf32> to vector<18x15xf32>
    %62 = tpu.concatenate %61, %0 in 1 : vector<18x15xf32>, vector<18x1xf32> -> vector<18x16xf32>
    %63 = vector.extract_strided_slice %60 {offsets = [0, 0], sizes = [16, 16], strides = [1, 1]} : vector<18x16xf32> to vector<16x16xf32>
    %c9 = arith.constant 9 : index
    %64 = memref.load %arg2[%c9] : memref<36xf32, #tpu.memory_space<smem>>
    %65 = vector.broadcast %64 : f32 to vector<16x16xf32>
    %66 = arith.mulf %63, %65 : vector<16x16xf32>
    %67 = vector.extract_strided_slice %58 {offsets = [0, 0], sizes = [16, 16], strides = [1, 1]} : vector<18x16xf32> to vector<16x16xf32>
    %c10 = arith.constant 10 : index
    %68 = memref.load %arg2[%c10] : memref<36xf32, #tpu.memory_space<smem>>
    %69 = vector.broadcast %68 : f32 to vector<16x16xf32>
    %70 = arith.mulf %67, %69 : vector<16x16xf32>
    %71 = arith.addf %66, %70 : vector<16x16xf32>
    %72 = vector.extract_strided_slice %62 {offsets = [0, 0], sizes = [16, 16], strides = [1, 1]} : vector<18x16xf32> to vector<16x16xf32>
    %c11 = arith.constant 11 : index
    %73 = memref.load %arg2[%c11] : memref<36xf32, #tpu.memory_space<smem>>
    %74 = vector.broadcast %73 : f32 to vector<16x16xf32>
    %75 = arith.mulf %72, %74 : vector<16x16xf32>
    %76 = arith.addf %71, %75 : vector<16x16xf32>
    %77 = vector.extract_strided_slice %60 {offsets = [1, 0], sizes = [16, 16], strides = [1, 1]} : vector<18x16xf32> to vector<16x16xf32>
    %c12 = arith.constant 12 : index
    %78 = memref.load %arg2[%c12] : memref<36xf32, #tpu.memory_space<smem>>
    %79 = vector.broadcast %78 : f32 to vector<16x16xf32>
    %80 = arith.mulf %77, %79 : vector<16x16xf32>
    %81 = arith.addf %76, %80 : vector<16x16xf32>
    %82 = vector.extract_strided_slice %58 {offsets = [1, 0], sizes = [16, 16], strides = [1, 1]} : vector<18x16xf32> to vector<16x16xf32>
    %c13 = arith.constant 13 : index
    %83 = memref.load %arg2[%c13] : memref<36xf32, #tpu.memory_space<smem>>
    %84 = vector.broadcast %83 : f32 to vector<16x16xf32>
    %85 = arith.mulf %82, %84 : vector<16x16xf32>
    %86 = arith.addf %81, %85 : vector<16x16xf32>
    %87 = vector.extract_strided_slice %62 {offsets = [1, 0], sizes = [16, 16], strides = [1, 1]} : vector<18x16xf32> to vector<16x16xf32>
    %c14 = arith.constant 14 : index
    %88 = memref.load %arg2[%c14] : memref<36xf32, #tpu.memory_space<smem>>
    %89 = vector.broadcast %88 : f32 to vector<16x16xf32>
    %90 = arith.mulf %87, %89 : vector<16x16xf32>
    %91 = arith.addf %86, %90 : vector<16x16xf32>
    %92 = vector.extract_strided_slice %60 {offsets = [2, 0], sizes = [16, 16], strides = [1, 1]} : vector<18x16xf32> to vector<16x16xf32>
    %c15 = arith.constant 15 : index
    %93 = memref.load %arg2[%c15] : memref<36xf32, #tpu.memory_space<smem>>
    %94 = vector.broadcast %93 : f32 to vector<16x16xf32>
    %95 = arith.mulf %92, %94 : vector<16x16xf32>
    %96 = arith.addf %91, %95 : vector<16x16xf32>
    %97 = vector.extract_strided_slice %58 {offsets = [2, 0], sizes = [16, 16], strides = [1, 1]} : vector<18x16xf32> to vector<16x16xf32>
    %c16 = arith.constant 16 : index
    %98 = memref.load %arg2[%c16] : memref<36xf32, #tpu.memory_space<smem>>
    %99 = vector.broadcast %98 : f32 to vector<16x16xf32>
    %100 = arith.mulf %97, %99 : vector<16x16xf32>
    %101 = arith.addf %96, %100 : vector<16x16xf32>
    %102 = vector.extract_strided_slice %62 {offsets = [2, 0], sizes = [16, 16], strides = [1, 1]} : vector<18x16xf32> to vector<16x16xf32>
    %c17 = arith.constant 17 : index
    %103 = memref.load %arg2[%c17] : memref<36xf32, #tpu.memory_space<smem>>
    %104 = vector.broadcast %103 : f32 to vector<16x16xf32>
    %105 = arith.mulf %102, %104 : vector<16x16xf32>
    %106 = arith.addf %101, %105 : vector<16x16xf32>
    %c1_10 = arith.constant 1 : index
    %107 = memref.load %arg3[%c1_10] : memref<4xf32, #tpu.memory_space<smem>>
    %108 = vector.broadcast %107 : f32 to vector<16x16xf32>
    %109 = arith.addf %106, %108 : vector<16x16xf32>
    %c0_11 = arith.constant 0 : index
    %c2_12 = arith.constant 2 : index
    %c0_13 = arith.constant 0 : index
    %c0_14 = arith.constant 0 : index
    %110 = vector.load %arg1[%c0_11, %c2_12, %c0_13, %c0_14] : memref<1x4x16x16xf32, #tpu.memory_space<vmem>>, vector<1x1x16x16xf32>
    %111 = vector.shape_cast %110 : vector<1x1x16x16xf32> to vector<16x16xf32>
    %112 = tpu.concatenate %1, %111, %1 in 0 : vector<1x16xf32>, vector<16x16xf32>, vector<1x16xf32> -> vector<18x16xf32>
    %113 = vector.extract_strided_slice %112 {offsets = [0, 0], sizes = [18, 15], strides = [1, 1]} : vector<18x16xf32> to vector<18x15xf32>
    %114 = tpu.concatenate %0, %113 in 1 : vector<18x1xf32>, vector<18x15xf32> -> vector<18x16xf32>
    %115 = vector.extract_strided_slice %112 {offsets = [0, 1], sizes = [18, 15], strides = [1, 1]} : vector<18x16xf32> to vector<18x15xf32>
    %116 = tpu.concatenate %115, %0 in 1 : vector<18x15xf32>, vector<18x1xf32> -> vector<18x16xf32>
    %117 = vector.extract_strided_slice %114 {offsets = [0, 0], sizes = [16, 16], strides = [1, 1]} : vector<18x16xf32> to vector<16x16xf32>
    %c18 = arith.constant 18 : index
    %118 = memref.load %arg2[%c18] : memref<36xf32, #tpu.memory_space<smem>>
    %119 = vector.broadcast %118 : f32 to vector<16x16xf32>
    %120 = arith.mulf %117, %119 : vector<16x16xf32>
    %121 = vector.extract_strided_slice %112 {offsets = [0, 0], sizes = [16, 16], strides = [1, 1]} : vector<18x16xf32> to vector<16x16xf32>
    %c19 = arith.constant 19 : index
    %122 = memref.load %arg2[%c19] : memref<36xf32, #tpu.memory_space<smem>>
    %123 = vector.broadcast %122 : f32 to vector<16x16xf32>
    %124 = arith.mulf %121, %123 : vector<16x16xf32>
    %125 = arith.addf %120, %124 : vector<16x16xf32>
    %126 = vector.extract_strided_slice %116 {offsets = [0, 0], sizes = [16, 16], strides = [1, 1]} : vector<18x16xf32> to vector<16x16xf32>
    %c20 = arith.constant 20 : index
    %127 = memref.load %arg2[%c20] : memref<36xf32, #tpu.memory_space<smem>>
    %128 = vector.broadcast %127 : f32 to vector<16x16xf32>
    %129 = arith.mulf %126, %128 : vector<16x16xf32>
    %130 = arith.addf %125, %129 : vector<16x16xf32>
    %131 = vector.extract_strided_slice %114 {offsets = [1, 0], sizes = [16, 16], strides = [1, 1]} : vector<18x16xf32> to vector<16x16xf32>
    %c21 = arith.constant 21 : index
    %132 = memref.load %arg2[%c21] : memref<36xf32, #tpu.memory_space<smem>>
    %133 = vector.broadcast %132 : f32 to vector<16x16xf32>
    %134 = arith.mulf %131, %133 : vector<16x16xf32>
    %135 = arith.addf %130, %134 : vector<16x16xf32>
    %136 = vector.extract_strided_slice %112 {offsets = [1, 0], sizes = [16, 16], strides = [1, 1]} : vector<18x16xf32> to vector<16x16xf32>
    %c22 = arith.constant 22 : index
    %137 = memref.load %arg2[%c22] : memref<36xf32, #tpu.memory_space<smem>>
    %138 = vector.broadcast %137 : f32 to vector<16x16xf32>
    %139 = arith.mulf %136, %138 : vector<16x16xf32>
    %140 = arith.addf %135, %139 : vector<16x16xf32>
    %141 = vector.extract_strided_slice %116 {offsets = [1, 0], sizes = [16, 16], strides = [1, 1]} : vector<18x16xf32> to vector<16x16xf32>
    %c23 = arith.constant 23 : index
    %142 = memref.load %arg2[%c23] : memref<36xf32, #tpu.memory_space<smem>>
    %143 = vector.broadcast %142 : f32 to vector<16x16xf32>
    %144 = arith.mulf %141, %143 : vector<16x16xf32>
    %145 = arith.addf %140, %144 : vector<16x16xf32>
    %146 = vector.extract_strided_slice %114 {offsets = [2, 0], sizes = [16, 16], strides = [1, 1]} : vector<18x16xf32> to vector<16x16xf32>
    %c24 = arith.constant 24 : index
    %147 = memref.load %arg2[%c24] : memref<36xf32, #tpu.memory_space<smem>>
    %148 = vector.broadcast %147 : f32 to vector<16x16xf32>
    %149 = arith.mulf %146, %148 : vector<16x16xf32>
    %150 = arith.addf %145, %149 : vector<16x16xf32>
    %151 = vector.extract_strided_slice %112 {offsets = [2, 0], sizes = [16, 16], strides = [1, 1]} : vector<18x16xf32> to vector<16x16xf32>
    %c25 = arith.constant 25 : index
    %152 = memref.load %arg2[%c25] : memref<36xf32, #tpu.memory_space<smem>>
    %153 = vector.broadcast %152 : f32 to vector<16x16xf32>
    %154 = arith.mulf %151, %153 : vector<16x16xf32>
    %155 = arith.addf %150, %154 : vector<16x16xf32>
    %156 = vector.extract_strided_slice %116 {offsets = [2, 0], sizes = [16, 16], strides = [1, 1]} : vector<18x16xf32> to vector<16x16xf32>
    %c26 = arith.constant 26 : index
    %157 = memref.load %arg2[%c26] : memref<36xf32, #tpu.memory_space<smem>>
    %158 = vector.broadcast %157 : f32 to vector<16x16xf32>
    %159 = arith.mulf %156, %158 : vector<16x16xf32>
    %160 = arith.addf %155, %159 : vector<16x16xf32>
    %c2_15 = arith.constant 2 : index
    %161 = memref.load %arg3[%c2_15] : memref<4xf32, #tpu.memory_space<smem>>
    %162 = vector.broadcast %161 : f32 to vector<16x16xf32>
    %163 = arith.addf %160, %162 : vector<16x16xf32>
    %c0_16 = arith.constant 0 : index
    %c3_17 = arith.constant 3 : index
    %c0_18 = arith.constant 0 : index
    %c0_19 = arith.constant 0 : index
    %164 = vector.load %arg1[%c0_16, %c3_17, %c0_18, %c0_19] : memref<1x4x16x16xf32, #tpu.memory_space<vmem>>, vector<1x1x16x16xf32>
    %165 = vector.shape_cast %164 : vector<1x1x16x16xf32> to vector<16x16xf32>
    %166 = tpu.concatenate %1, %165, %1 in 0 : vector<1x16xf32>, vector<16x16xf32>, vector<1x16xf32> -> vector<18x16xf32>
    %167 = vector.extract_strided_slice %166 {offsets = [0, 0], sizes = [18, 15], strides = [1, 1]} : vector<18x16xf32> to vector<18x15xf32>
    %168 = tpu.concatenate %0, %167 in 1 : vector<18x1xf32>, vector<18x15xf32> -> vector<18x16xf32>
    %169 = vector.extract_strided_slice %166 {offsets = [0, 1], sizes = [18, 15], strides = [1, 1]} : vector<18x16xf32> to vector<18x15xf32>
    %170 = tpu.concatenate %169, %0 in 1 : vector<18x15xf32>, vector<18x1xf32> -> vector<18x16xf32>
    %171 = vector.extract_strided_slice %168 {offsets = [0, 0], sizes = [16, 16], strides = [1, 1]} : vector<18x16xf32> to vector<16x16xf32>
    %c27 = arith.constant 27 : index
    %172 = memref.load %arg2[%c27] : memref<36xf32, #tpu.memory_space<smem>>
    %173 = vector.broadcast %172 : f32 to vector<16x16xf32>
    %174 = arith.mulf %171, %173 : vector<16x16xf32>
    %175 = vector.extract_strided_slice %166 {offsets = [0, 0], sizes = [16, 16], strides = [1, 1]} : vector<18x16xf32> to vector<16x16xf32>
    %c28 = arith.constant 28 : index
    %176 = memref.load %arg2[%c28] : memref<36xf32, #tpu.memory_space<smem>>
    %177 = vector.broadcast %176 : f32 to vector<16x16xf32>
    %178 = arith.mulf %175, %177 : vector<16x16xf32>
    %179 = arith.addf %174, %178 : vector<16x16xf32>
    %180 = vector.extract_strided_slice %170 {offsets = [0, 0], sizes = [16, 16], strides = [1, 1]} : vector<18x16xf32> to vector<16x16xf32>
    %c29 = arith.constant 29 : index
    %181 = memref.load %arg2[%c29] : memref<36xf32, #tpu.memory_space<smem>>
    %182 = vector.broadcast %181 : f32 to vector<16x16xf32>
    %183 = arith.mulf %180, %182 : vector<16x16xf32>
    %184 = arith.addf %179, %183 : vector<16x16xf32>
    %185 = vector.extract_strided_slice %168 {offsets = [1, 0], sizes = [16, 16], strides = [1, 1]} : vector<18x16xf32> to vector<16x16xf32>
    %c30 = arith.constant 30 : index
    %186 = memref.load %arg2[%c30] : memref<36xf32, #tpu.memory_space<smem>>
    %187 = vector.broadcast %186 : f32 to vector<16x16xf32>
    %188 = arith.mulf %185, %187 : vector<16x16xf32>
    %189 = arith.addf %184, %188 : vector<16x16xf32>
    %190 = vector.extract_strided_slice %166 {offsets = [1, 0], sizes = [16, 16], strides = [1, 1]} : vector<18x16xf32> to vector<16x16xf32>
    %c31 = arith.constant 31 : index
    %191 = memref.load %arg2[%c31] : memref<36xf32, #tpu.memory_space<smem>>
    %192 = vector.broadcast %191 : f32 to vector<16x16xf32>
    %193 = arith.mulf %190, %192 : vector<16x16xf32>
    %194 = arith.addf %189, %193 : vector<16x16xf32>
    %195 = vector.extract_strided_slice %170 {offsets = [1, 0], sizes = [16, 16], strides = [1, 1]} : vector<18x16xf32> to vector<16x16xf32>
    %c32 = arith.constant 32 : index
    %196 = memref.load %arg2[%c32] : memref<36xf32, #tpu.memory_space<smem>>
    %197 = vector.broadcast %196 : f32 to vector<16x16xf32>
    %198 = arith.mulf %195, %197 : vector<16x16xf32>
    %199 = arith.addf %194, %198 : vector<16x16xf32>
    %200 = vector.extract_strided_slice %168 {offsets = [2, 0], sizes = [16, 16], strides = [1, 1]} : vector<18x16xf32> to vector<16x16xf32>
    %c33 = arith.constant 33 : index
    %201 = memref.load %arg2[%c33] : memref<36xf32, #tpu.memory_space<smem>>
    %202 = vector.broadcast %201 : f32 to vector<16x16xf32>
    %203 = arith.mulf %200, %202 : vector<16x16xf32>
    %204 = arith.addf %199, %203 : vector<16x16xf32>
    %205 = vector.extract_strided_slice %166 {offsets = [2, 0], sizes = [16, 16], strides = [1, 1]} : vector<18x16xf32> to vector<16x16xf32>
    %c34 = arith.constant 34 : index
    %206 = memref.load %arg2[%c34] : memref<36xf32, #tpu.memory_space<smem>>
    %207 = vector.broadcast %206 : f32 to vector<16x16xf32>
    %208 = arith.mulf %205, %207 : vector<16x16xf32>
    %209 = arith.addf %204, %208 : vector<16x16xf32>
    %210 = vector.extract_strided_slice %170 {offsets = [2, 0], sizes = [16, 16], strides = [1, 1]} : vector<18x16xf32> to vector<16x16xf32>
    %c35 = arith.constant 35 : index
    %211 = memref.load %arg2[%c35] : memref<36xf32, #tpu.memory_space<smem>>
    %212 = vector.broadcast %211 : f32 to vector<16x16xf32>
    %213 = arith.mulf %210, %212 : vector<16x16xf32>
    %214 = arith.addf %209, %213 : vector<16x16xf32>
    %c3_20 = arith.constant 3 : index
    %215 = memref.load %arg3[%c3_20] : memref<4xf32, #tpu.memory_space<smem>>
    %216 = vector.broadcast %215 : f32 to vector<16x16xf32>
    %217 = arith.addf %214, %216 : vector<16x16xf32>
    %c0_21 = arith.constant 0 : index
    %218 = memref.load %arg4[%c0_21] : memref<32xf32, #tpu.memory_space<smem>>
    %219 = vector.broadcast %218 : f32 to vector<16x16xf32>
    %220 = arith.mulf %55, %219 : vector<16x16xf32>
    %c1_22 = arith.constant 1 : index
    %221 = memref.load %arg4[%c1_22] : memref<32xf32, #tpu.memory_space<smem>>
    %222 = vector.broadcast %221 : f32 to vector<16x16xf32>
    %223 = arith.mulf %109, %222 : vector<16x16xf32>
    %224 = arith.addf %220, %223 : vector<16x16xf32>
    %c2_23 = arith.constant 2 : index
    %225 = memref.load %arg4[%c2_23] : memref<32xf32, #tpu.memory_space<smem>>
    %226 = vector.broadcast %225 : f32 to vector<16x16xf32>
    %227 = arith.mulf %163, %226 : vector<16x16xf32>
    %228 = arith.addf %224, %227 : vector<16x16xf32>
    %c3_24 = arith.constant 3 : index
    %229 = memref.load %arg4[%c3_24] : memref<32xf32, #tpu.memory_space<smem>>
    %230 = vector.broadcast %229 : f32 to vector<16x16xf32>
    %231 = arith.mulf %217, %230 : vector<16x16xf32>
    %232 = arith.addf %228, %231 : vector<16x16xf32>
    %c0_25 = arith.constant 0 : index
    %233 = memref.load %arg5[%c0_25] : memref<8xf32, #tpu.memory_space<smem>>
    %234 = vector.broadcast %233 : f32 to vector<16x16xf32>
    %235 = arith.addf %232, %234 : vector<16x16xf32>
    %c0_26 = arith.constant 0 : index
    %c0_27 = arith.constant 0 : index
    %c0_28 = arith.constant 0 : index
    %c0_29 = arith.constant 0 : index
    %236 = vector.load %arg6[%c0_26, %c0_27, %c0_28, %c0_29] : memref<1x8x16x16xf32, #tpu.memory_space<vmem>>, vector<1x1x16x16xf32>
    %237 = vector.shape_cast %236 : vector<1x1x16x16xf32> to vector<16x16xf32>
    %238 = vector.shape_cast %235 : vector<16x16xf32> to vector<1x1x16x16xf32>
    tpu.vector_store %arg6[%c0_26, %c0_27, %c0_28, %c0_29], %238 {strides = array<i32>} : memref<1x8x16x16xf32, #tpu.memory_space<vmem>>, vector<1x1x16x16xf32>,
    %c4_30 = arith.constant 4 : index
    %239 = memref.load %arg4[%c4_30] : memref<32xf32, #tpu.memory_space<smem>>
    %240 = vector.broadcast %239 : f32 to vector<16x16xf32>
    %241 = arith.mulf %55, %240 : vector<16x16xf32>
    %c5_31 = arith.constant 5 : index
    %242 = memref.load %arg4[%c5_31] : memref<32xf32, #tpu.memory_space<smem>>
    %243 = vector.broadcast %242 : f32 to vector<16x16xf32>
    %244 = arith.mulf %109, %243 : vector<16x16xf32>
    %245 = arith.addf %241, %244 : vector<16x16xf32>
    %c6_32 = arith.constant 6 : index
    %246 = memref.load %arg4[%c6_32] : memref<32xf32, #tpu.memory_space<smem>>
    %247 = vector.broadcast %246 : f32 to vector<16x16xf32>
    %248 = arith.mulf %163, %247 : vector<16x16xf32>
    %249 = arith.addf %245, %248 : vector<16x16xf32>
    %c7_33 = arith.constant 7 : index
    %250 = memref.load %arg4[%c7_33] : memref<32xf32, #tpu.memory_space<smem>>
    %251 = vector.broadcast %250 : f32 to vector<16x16xf32>
    %252 = arith.mulf %217, %251 : vector<16x16xf32>
    %253 = arith.addf %249, %252 : vector<16x16xf32>
    %c1_34 = arith.constant 1 : index
    %254 = memref.load %arg5[%c1_34] : memref<8xf32, #tpu.memory_space<smem>>
    %255 = vector.broadcast %254 : f32 to vector<16x16xf32>
    %256 = arith.addf %253, %255 : vector<16x16xf32>
    %c0_35 = arith.constant 0 : index
    %c1_36 = arith.constant 1 : index
    %c0_37 = arith.constant 0 : index
    %c0_38 = arith.constant 0 : index
    %257 = vector.load %arg6[%c0_35, %c1_36, %c0_37, %c0_38] : memref<1x8x16x16xf32, #tpu.memory_space<vmem>>, vector<1x1x16x16xf32>
    %258 = vector.shape_cast %257 : vector<1x1x16x16xf32> to vector<16x16xf32>
    %259 = vector.shape_cast %256 : vector<16x16xf32> to vector<1x1x16x16xf32>
    tpu.vector_store %arg6[%c0_35, %c1_36, %c0_37, %c0_38], %259 {strides = array<i32>} : memref<1x8x16x16xf32, #tpu.memory_space<vmem>>, vector<1x1x16x16xf32>,
    %c8_39 = arith.constant 8 : index
    %260 = memref.load %arg4[%c8_39] : memref<32xf32, #tpu.memory_space<smem>>
    %261 = vector.broadcast %260 : f32 to vector<16x16xf32>
    %262 = arith.mulf %55, %261 : vector<16x16xf32>
    %c9_40 = arith.constant 9 : index
    %263 = memref.load %arg4[%c9_40] : memref<32xf32, #tpu.memory_space<smem>>
    %264 = vector.broadcast %263 : f32 to vector<16x16xf32>
    %265 = arith.mulf %109, %264 : vector<16x16xf32>
    %266 = arith.addf %262, %265 : vector<16x16xf32>
    %c10_41 = arith.constant 10 : index
    %267 = memref.load %arg4[%c10_41] : memref<32xf32, #tpu.memory_space<smem>>
    %268 = vector.broadcast %267 : f32 to vector<16x16xf32>
    %269 = arith.mulf %163, %268 : vector<16x16xf32>
    %270 = arith.addf %266, %269 : vector<16x16xf32>
    %c11_42 = arith.constant 11 : index
    %271 = memref.load %arg4[%c11_42] : memref<32xf32, #tpu.memory_space<smem>>
    %272 = vector.broadcast %271 : f32 to vector<16x16xf32>
    %273 = arith.mulf %217, %272 : vector<16x16xf32>
    %274 = arith.addf %270, %273 : vector<16x16xf32>
    %c2_43 = arith.constant 2 : index
    %275 = memref.load %arg5[%c2_43] : memref<8xf32, #tpu.memory_space<smem>>
    %276 = vector.broadcast %275 : f32 to vector<16x16xf32>
    %277 = arith.addf %274, %276 : vector<16x16xf32>
    %c0_44 = arith.constant 0 : index
    %c2_45 = arith.constant 2 : index
    %c0_46 = arith.constant 0 : index
    %c0_47 = arith.constant 0 : index
    %278 = vector.load %arg6[%c0_44, %c2_45, %c0_46, %c0_47] : memref<1x8x16x16xf32, #tpu.memory_space<vmem>>, vector<1x1x16x16xf32>
    %279 = vector.shape_cast %278 : vector<1x1x16x16xf32> to vector<16x16xf32>
    %280 = vector.shape_cast %277 : vector<16x16xf32> to vector<1x1x16x16xf32>
    tpu.vector_store %arg6[%c0_44, %c2_45, %c0_46, %c0_47], %280 {strides = array<i32>} : memref<1x8x16x16xf32, #tpu.memory_space<vmem>>, vector<1x1x16x16xf32>,
    %c12_48 = arith.constant 12 : index
    %281 = memref.load %arg4[%c12_48] : memref<32xf32, #tpu.memory_space<smem>>
    %282 = vector.broadcast %281 : f32 to vector<16x16xf32>
    %283 = arith.mulf %55, %282 : vector<16x16xf32>
    %c13_49 = arith.constant 13 : index
    %284 = memref.load %arg4[%c13_49] : memref<32xf32, #tpu.memory_space<smem>>
    %285 = vector.broadcast %284 : f32 to vector<16x16xf32>
    %286 = arith.mulf %109, %285 : vector<16x16xf32>
    %287 = arith.addf %283, %286 : vector<16x16xf32>
    %c14_50 = arith.constant 14 : index
    %288 = memref.load %arg4[%c14_50] : memref<32xf32, #tpu.memory_space<smem>>
    %289 = vector.broadcast %288 : f32 to vector<16x16xf32>
    %290 = arith.mulf %163, %289 : vector<16x16xf32>
    %291 = arith.addf %287, %290 : vector<16x16xf32>
    %c15_51 = arith.constant 15 : index
    %292 = memref.load %arg4[%c15_51] : memref<32xf32, #tpu.memory_space<smem>>
    %293 = vector.broadcast %292 : f32 to vector<16x16xf32>
    %294 = arith.mulf %217, %293 : vector<16x16xf32>
    %295 = arith.addf %291, %294 : vector<16x16xf32>
    %c3_52 = arith.constant 3 : index
    %296 = memref.load %arg5[%c3_52] : memref<8xf32, #tpu.memory_space<smem>>
    %297 = vector.broadcast %296 : f32 to vector<16x16xf32>
    %298 = arith.addf %295, %297 : vector<16x16xf32>
    %c0_53 = arith.constant 0 : index
    %c3_54 = arith.constant 3 : index
    %c0_55 = arith.constant 0 : index
    %c0_56 = arith.constant 0 : index
    %299 = vector.load %arg6[%c0_53, %c3_54, %c0_55, %c0_56] : memref<1x8x16x16xf32, #tpu.memory_space<vmem>>, vector<1x1x16x16xf32>
    %300 = vector.shape_cast %299 : vector<1x1x16x16xf32> to vector<16x16xf32>
    %301 = vector.shape_cast %298 : vector<16x16xf32> to vector<1x1x16x16xf32>
    tpu.vector_store %arg6[%c0_53, %c3_54, %c0_55, %c0_56], %301 {strides = array<i32>} : memref<1x8x16x16xf32, #tpu.memory_space<vmem>>, vector<1x1x16x16xf32>,
    %c16_57 = arith.constant 16 : index
    %302 = memref.load %arg4[%c16_57] : memref<32xf32, #tpu.memory_space<smem>>
    %303 = vector.broadcast %302 : f32 to vector<16x16xf32>
    %304 = arith.mulf %55, %303 : vector<16x16xf32>
    %c17_58 = arith.constant 17 : index
    %305 = memref.load %arg4[%c17_58] : memref<32xf32, #tpu.memory_space<smem>>
    %306 = vector.broadcast %305 : f32 to vector<16x16xf32>
    %307 = arith.mulf %109, %306 : vector<16x16xf32>
    %308 = arith.addf %304, %307 : vector<16x16xf32>
    %c18_59 = arith.constant 18 : index
    %309 = memref.load %arg4[%c18_59] : memref<32xf32, #tpu.memory_space<smem>>
    %310 = vector.broadcast %309 : f32 to vector<16x16xf32>
    %311 = arith.mulf %163, %310 : vector<16x16xf32>
    %312 = arith.addf %308, %311 : vector<16x16xf32>
    %c19_60 = arith.constant 19 : index
    %313 = memref.load %arg4[%c19_60] : memref<32xf32, #tpu.memory_space<smem>>
    %314 = vector.broadcast %313 : f32 to vector<16x16xf32>
    %315 = arith.mulf %217, %314 : vector<16x16xf32>
    %316 = arith.addf %312, %315 : vector<16x16xf32>
    %c4_61 = arith.constant 4 : index
    %317 = memref.load %arg5[%c4_61] : memref<8xf32, #tpu.memory_space<smem>>
    %318 = vector.broadcast %317 : f32 to vector<16x16xf32>
    %319 = arith.addf %316, %318 : vector<16x16xf32>
    %c0_62 = arith.constant 0 : index
    %c4_63 = arith.constant 4 : index
    %c0_64 = arith.constant 0 : index
    %c0_65 = arith.constant 0 : index
    %320 = vector.load %arg6[%c0_62, %c4_63, %c0_64, %c0_65] : memref<1x8x16x16xf32, #tpu.memory_space<vmem>>, vector<1x1x16x16xf32>
    %321 = vector.shape_cast %320 : vector<1x1x16x16xf32> to vector<16x16xf32>
    %322 = vector.shape_cast %319 : vector<16x16xf32> to vector<1x1x16x16xf32>
    tpu.vector_store %arg6[%c0_62, %c4_63, %c0_64, %c0_65], %322 {strides = array<i32>} : memref<1x8x16x16xf32, #tpu.memory_space<vmem>>, vector<1x1x16x16xf32>,
    %c20_66 = arith.constant 20 : index
    %323 = memref.load %arg4[%c20_66] : memref<32xf32, #tpu.memory_space<smem>>
    %324 = vector.broadcast %323 : f32 to vector<16x16xf32>
    %325 = arith.mulf %55, %324 : vector<16x16xf32>
    %c21_67 = arith.constant 21 : index
    %326 = memref.load %arg4[%c21_67] : memref<32xf32, #tpu.memory_space<smem>>
    %327 = vector.broadcast %326 : f32 to vector<16x16xf32>
    %328 = arith.mulf %109, %327 : vector<16x16xf32>
    %329 = arith.addf %325, %328 : vector<16x16xf32>
    %c22_68 = arith.constant 22 : index
    %330 = memref.load %arg4[%c22_68] : memref<32xf32, #tpu.memory_space<smem>>
    %331 = vector.broadcast %330 : f32 to vector<16x16xf32>
    %332 = arith.mulf %163, %331 : vector<16x16xf32>
    %333 = arith.addf %329, %332 : vector<16x16xf32>
    %c23_69 = arith.constant 23 : index
    %334 = memref.load %arg4[%c23_69] : memref<32xf32, #tpu.memory_space<smem>>
    %335 = vector.broadcast %334 : f32 to vector<16x16xf32>
    %336 = arith.mulf %217, %335 : vector<16x16xf32>
    %337 = arith.addf %333, %336 : vector<16x16xf32>
    %c5_70 = arith.constant 5 : index
    %338 = memref.load %arg5[%c5_70] : memref<8xf32, #tpu.memory_space<smem>>
    %339 = vector.broadcast %338 : f32 to vector<16x16xf32>
    %340 = arith.addf %337, %339 : vector<16x16xf32>
    %c0_71 = arith.constant 0 : index
    %c5_72 = arith.constant 5 : index
    %c0_73 = arith.constant 0 : index
    %c0_74 = arith.constant 0 : index
    %341 = vector.load %arg6[%c0_71, %c5_72, %c0_73, %c0_74] : memref<1x8x16x16xf32, #tpu.memory_space<vmem>>, vector<1x1x16x16xf32>
    %342 = vector.shape_cast %341 : vector<1x1x16x16xf32> to vector<16x16xf32>
    %343 = vector.shape_cast %340 : vector<16x16xf32> to vector<1x1x16x16xf32>
    tpu.vector_store %arg6[%c0_71, %c5_72, %c0_73, %c0_74], %343 {strides = array<i32>} : memref<1x8x16x16xf32, #tpu.memory_space<vmem>>, vector<1x1x16x16xf32>,
    %c24_75 = arith.constant 24 : index
    %344 = memref.load %arg4[%c24_75] : memref<32xf32, #tpu.memory_space<smem>>
    %345 = vector.broadcast %344 : f32 to vector<16x16xf32>
    %346 = arith.mulf %55, %345 : vector<16x16xf32>
    %c25_76 = arith.constant 25 : index
    %347 = memref.load %arg4[%c25_76] : memref<32xf32, #tpu.memory_space<smem>>
    %348 = vector.broadcast %347 : f32 to vector<16x16xf32>
    %349 = arith.mulf %109, %348 : vector<16x16xf32>
    %350 = arith.addf %346, %349 : vector<16x16xf32>
    %c26_77 = arith.constant 26 : index
    %351 = memref.load %arg4[%c26_77] : memref<32xf32, #tpu.memory_space<smem>>
    %352 = vector.broadcast %351 : f32 to vector<16x16xf32>
    %353 = arith.mulf %163, %352 : vector<16x16xf32>
    %354 = arith.addf %350, %353 : vector<16x16xf32>
    %c27_78 = arith.constant 27 : index
    %355 = memref.load %arg4[%c27_78] : memref<32xf32, #tpu.memory_space<smem>>
    %356 = vector.broadcast %355 : f32 to vector<16x16xf32>
    %357 = arith.mulf %217, %356 : vector<16x16xf32>
    %358 = arith.addf %354, %357 : vector<16x16xf32>
    %c6_79 = arith.constant 6 : index
    %359 = memref.load %arg5[%c6_79] : memref<8xf32, #tpu.memory_space<smem>>
    %360 = vector.broadcast %359 : f32 to vector<16x16xf32>
    %361 = arith.addf %358, %360 : vector<16x16xf32>
    %c0_80 = arith.constant 0 : index
    %c6_81 = arith.constant 6 : index
    %c0_82 = arith.constant 0 : index
    %c0_83 = arith.constant 0 : index
    %362 = vector.load %arg6[%c0_80, %c6_81, %c0_82, %c0_83] : memref<1x8x16x16xf32, #tpu.memory_space<vmem>>, vector<1x1x16x16xf32>
    %363 = vector.shape_cast %362 : vector<1x1x16x16xf32> to vector<16x16xf32>
    %364 = vector.shape_cast %361 : vector<16x16xf32> to vector<1x1x16x16xf32>
    tpu.vector_store %arg6[%c0_80, %c6_81, %c0_82, %c0_83], %364 {strides = array<i32>} : memref<1x8x16x16xf32, #tpu.memory_space<vmem>>, vector<1x1x16x16xf32>,
    %c28_84 = arith.constant 28 : index
    %365 = memref.load %arg4[%c28_84] : memref<32xf32, #tpu.memory_space<smem>>
    %366 = vector.broadcast %365 : f32 to vector<16x16xf32>
    %367 = arith.mulf %55, %366 : vector<16x16xf32>
    %c29_85 = arith.constant 29 : index
    %368 = memref.load %arg4[%c29_85] : memref<32xf32, #tpu.memory_space<smem>>
    %369 = vector.broadcast %368 : f32 to vector<16x16xf32>
    %370 = arith.mulf %109, %369 : vector<16x16xf32>
    %371 = arith.addf %367, %370 : vector<16x16xf32>
    %c30_86 = arith.constant 30 : index
    %372 = memref.load %arg4[%c30_86] : memref<32xf32, #tpu.memory_space<smem>>
    %373 = vector.broadcast %372 : f32 to vector<16x16xf32>
    %374 = arith.mulf %163, %373 : vector<16x16xf32>
    %375 = arith.addf %371, %374 : vector<16x16xf32>
    %c31_87 = arith.constant 31 : index
    %376 = memref.load %arg4[%c31_87] : memref<32xf32, #tpu.memory_space<smem>>
    %377 = vector.broadcast %376 : f32 to vector<16x16xf32>
    %378 = arith.mulf %217, %377 : vector<16x16xf32>
    %379 = arith.addf %375, %378 : vector<16x16xf32>
    %c7_88 = arith.constant 7 : index
    %380 = memref.load %arg5[%c7_88] : memref<8xf32, #tpu.memory_space<smem>>
    %381 = vector.broadcast %380 : f32 to vector<16x16xf32>
    %382 = arith.addf %379, %381 : vector<16x16xf32>
    %c0_89 = arith.constant 0 : index
    %c7_90 = arith.constant 7 : index
    %c0_91 = arith.constant 0 : index
    %c0_92 = arith.constant 0 : index
    %383 = vector.load %arg6[%c0_89, %c7_90, %c0_91, %c0_92] : memref<1x8x16x16xf32, #tpu.memory_space<vmem>>, vector<1x1x16x16xf32>
    %384 = vector.shape_cast %383 : vector<1x1x16x16xf32> to vector<16x16xf32>
    %385 = vector.shape_cast %382 : vector<16x16xf32> to vector<1x1x16x16xf32>
    tpu.vector_store %arg6[%c0_89, %c7_90, %c0_91, %c0_92], %385 {strides = array<i32>} : memref<1x8x16x16xf32, #tpu.memory_space<vmem>>, vector<1x1x16x16xf32>,
    return
  }
  func.func @transform_0(%arg0: i32) -> (i32, i32, i32, i32) {
    %c0_i32 = arith.constant 0 : i32
    %c0_i32_0 = arith.constant 0 : i32
    %c0_i32_1 = arith.constant 0 : i32
    %c0_i32_2 = arith.constant 0 : i32
    return %arg0, %c0_i32, %c0_i32_0, %c0_i32_1 : i32, i32, i32, i32
  }
  func.func @transform_1(%arg0: i32) -> i32 {
    %c0_i32 = arith.constant 0 : i32
    %c0_i32_0 = arith.constant 0 : i32
    return %c0_i32 : i32
  }
  func.func @transform_2(%arg0: i32) -> i32 {
    %c0_i32 = arith.constant 0 : i32
    %c0_i32_0 = arith.constant 0 : i32
    return %c0_i32 : i32
  }
  func.func @transform_3(%arg0: i32) -> i32 {
    %c0_i32 = arith.constant 0 : i32
    %c0_i32_0 = arith.constant 0 : i32
    return %c0_i32 : i32
  }
  func.func @transform_4(%arg0: i32) -> i32 {
    %c0_i32 = arith.constant 0 : i32
    %c0_i32_0 = arith.constant 0 : i32
    return %c0_i32 : i32
  }
  func.func @transform_5(%arg0: i32) -> (i32, i32, i32, i32) {
    %c0_i32 = arith.constant 0 : i32
    %c0_i32_0 = arith.constant 0 : i32
    %c0_i32_1 = arith.constant 0 : i32
    %c0_i32_2 = arith.constant 0 : i32
    return %arg0, %c0_i32, %c0_i32_0, %c0_i32_1 : i32, i32, i32, i32
  }
}

</mosaic_0001>

<bundles_post_ra>
// kernel: depthwise_separable_conv.1
= control target key start
LH: loop header
LB: loop body
LE: loop exit
PB: predicated region body
PF: predicated region fallthrough
CT: control target
= control target key end

     0   :  { %s2945_s0 = inlined_call_operand.hbm [shape: f32[2,4,16,16], index: 0, kind: input, shape index: {}]   ;;  %s2946_s1 = inlined_call_operand.vmem [shape: f32[36], index: 1, kind: input, shape index: {}]   ;;  %s2947_s2 = inlined_call_operand.vmem [shape: f32[4], index: 2, kind: input, shape index: {}]   ;;  %s2948_s3 = inlined_call_operand.vmem [shape: f32[32], index: 3, kind: input, shape index: {}]   ;;  %s2949_s4 = inlined_call_operand.vmem [shape: f32[8], index: 4, kind: input, shape index: {}]   ;;  %s2950_s5 = inlined_call_operand.hbm [shape: f32[2,8,16,16], index: 5, kind: output, shape index: {}]  }
   0x1   :  { %3011 = sst [smem:[#allocation57_spill]] %s2945_s0 }
   0x2   :  { %3012 = sst [smem:[#allocation58_spill]] %s2946_s1 }
   0x3   :  { %3013 = sst [smem:[#allocation59_spill]] %s2947_s2 }
   0x4   :  { %3014 = sst [smem:[#allocation60_spill]] %s2948_s3 }
   0x5   :  { %3015 = sst [smem:[#allocation61_spill]] %s2949_s4 }
   0x6   :  { %3016 = sst [smem:[#allocation62_spill]] %s2950_s5 }
   0x7   :  { %10 = vsyncpa [#allocation3], 0 }
   0x8   :  { %12 = vsyncpa [#allocation3 + $0x1], 0 }
   0x9   :  { %13 = vsyncpa [#allocation5], 0 }
   0xa   :  { %14 = vsyncpa [#allocation8], 0 }
   0xb   :  { %15 = vsyncpa [#allocation11], 0 }
   0xc   :  { %16 = vsyncpa [#allocation4], 0 }
   0xd   :  { %18 = vsyncpa [#allocation4 + $0x1], 0  ;;  %s1724_s18 = smov 0   ;;  %s1726_s19 = smov 0  }
   0xe   :  { %s1728_s20 = smov 0   ;;  %s1730_s21 = smov 0  }
   0xf LB: > { %3017 = sst [smem:[#allocation18_spill]] %s1668_s18  ;;  %s1745_s22 = sadd.s32 4294967295, %s1680_s21   ;;  %s1680_s21 = sphi %s1730_s21, %s3213_s21   ;;  %s1676_s20 = sphi %s1728_s20, %s3216_s20   ;;  %s1672_s19 = sphi %s1726_s19, %s3215_s19   ;;  %s1668_s18 = sphi %s1724_s18, %s3214_s18  }
  0x10   : > { %3018 = sst [smem:[#allocation19_spill]] %s1672_s19  ;;  %s1303_s23 = sadd.s32 4294967294, %s1680_s21  }
  0x11   : > { %3019 = sst [smem:[#allocation20_spill]] %s1676_s20  ;;  %p44_p0 = scmp.ne.s32.totalorder %s1672_s19, %s1668_s18 }
  0x12   : > { %3020 = sst [smem:[#allocation21_spill]] %s1680_s21  ;;  %p2951_p1 = scmp.eq.s32.totalorder %s1745_s22, 0 }
  0x13   : > { %3021 = sst [smem:[#allocation22_spill]] %s1745_s22  ;;  %p158_p3 = scmp.eq.s32.totalorder %s1303_s23, 1 }
  0x14   : > { %p1754_p4 = por %p2951_p1, %p44_p0  ;;  %p1304_p5 = scmp.ge.s32.totalorder %s1680_s21, 1 }
  0x15   : > { %p1759_p6 = por %p158_p3, %p44_p0  ;;  %p165_p7 = scmp.lt.s32.totalorder %s1680_s21, 3 }
  0x16   : > { %s3022_s24 = scalar_select %p1754_p4, 1, 0 }
  0x17   : > { %s3023_s25 = scalar_select %p1759_p6, 1, 0 }
  0x18   : > { %s3025_s2 = sld [smem:[#allocation59_spill]]  ;;  %p1767_p8 = pnand %p1304_p5, %p165_p7 }
  0x19   : > { %3024 = sst [smem:[#allocation23_spill]] %s3023_s25 }
  0x1a   : > { %s3026_s29 = scalar_select %p1767_p8, 1, 0 }
  0x1b   : > { %p1443_p10 = pneg %p1767_p8  ;;  %s3027_s1 = sld [smem:[#allocation58_spill]] }
  0x1c   : > { %s3029_s3 = sld [smem:[#allocation60_spill]] }
  0x1d   : > { %p1779_p11 = pnand %p1443_p10, %p2951_p1  ;;  %s3030_s4 = sld [smem:[#allocation61_spill]] }
  0x1e   : > { %s189_s28 = sshll.u32 %s3025_s2, 4  ;;  %s190_s28 = int_to_ptr.vmem [resolvable:$true] %s189_s28 }
  0x1f   : > { %s1516_s15 = scalar_lea.vmem %s190_s28, 16  ;;  %p1518_p13 = pneg %p1779_p11 }
  0x20   : > { %p1517_p12 = scmp.ne.s32.totalorder %s190_s28, %s1516_s15  ;;  %p1524_p5 = scmp.lt.s32.totalorder %s190_s28, %s190_s28 }
  0x21   : > { %s178_s7 = sshll.u32 %s3027_s1, 4  ;;  %p1525_p7 = scmp.lt.s32.totalorder %s1516_s15, %s1516_s15  ;;  %s179_s7 = int_to_ptr.vmem [resolvable:$true] %s178_s7 }
  0x22   : > { %s200_s11 = sshll.u32 %s3029_s3, 4  ;;  %p1519_p0 = pnand %p1518_p13, %p1517_p12  ;;  %s1786_s11 = int_to_ptr.vmem [resolvable:$true] %s200_s11 }
  0x23   : > { %s211_s14 = sshll.u32 %s3030_s4, 4  ;;  %p1526_p10 = por %p1525_p7, %p1524_p5  ;;  %s212_s14 = int_to_ptr.vmem [resolvable:$true] %s211_s14 }
  0x24   : > { %p1520_p3 = pneg %p1519_p0 }
  0x26   : > { %p1527_p9 = pnand %p1526_p10, %p1520_p3 }
  0x28   : > { %1530 = shalt.err (!%p1527_p9)
}
  0x29   : > { %s1682_s16 = smov [#allocation7]   ;;  %s1531_s17 = scalar_lea.vmem %s179_s7, 16 }
  0x2a   : > { %1449 = dma.vmem_to_smem (!%p1779_p11), %s190_s28, 16, %s1682_s16, [#allocation8]  }
  0x2b   : > { %p1532_p1 = scmp.ne.s32.totalorder %s179_s7, %s1531_s17  ;;  %p1539_p4 = scmp.lt.s32.totalorder %s179_s7, %s179_s7 }
  0x2c   : > { %p1540_p8 = scmp.lt.s32.totalorder %s1531_s17, %s1531_s17 }
  0x2d   : > { %p1534_p2 = pnand %p1532_p1, %p1518_p13 }
  0x2e   : > { %p1541_p12 = por %p1540_p8, %p1539_p4 }
  0x2f   : > { %p1535_p6 = pneg %p1534_p2 }
  0x31   : > { %p1542_p0 = pnand %p1541_p12, %p1535_p6 }
  0x33   : > { %1545 = shalt.err (!%p1542_p0)
}
  0x34   : > { %s1683_s23 = smov [#allocation6]   ;;  %s1546_s26 = scalar_lea.vmem %s1786_s11, 16 }
  0x35   : > { %1446 = dma.vmem_to_smem (!%p1779_p11), %s179_s7, 16, %s1683_s23, [#allocation5]  }
  0x36   : > { %p1547_p9 = scmp.ne.s32.totalorder %s1786_s11, %s1546_s26  ;;  %p1554_p2 = scmp.lt.s32.totalorder %s1786_s11, %s1786_s11 }
  0x37   : > { %p1555_p5 = scmp.lt.s32.totalorder %s1546_s26, %s1546_s26 }
  0x38   : > { %p1549_p3 = pnand %p1547_p9, %p1518_p13 }
  0x39   : > { %p1556_p4 = por %p1555_p5, %p1554_p2 }
  0x3a   : > { %p1550_p1 = pneg %p1549_p3 }
  0x3c   : > { %p1557_p6 = pnand %p1556_p4, %p1550_p1 }
  0x3e   : > { %1560 = shalt.err (!%p1557_p6)
}
  0x3f   : > { %s1684_s27 = smov [#allocation9]   ;;  %s1561_s6 = scalar_lea.vmem %s212_s14, 16 }
  0x40   : > { %1452 = dma.vmem_to_smem (!%p1779_p11), %s1786_s11, 16, %s1684_s27, [#allocation8]  }
  0x41   : > { %p1562_p8 = scmp.ne.s32.totalorder %s212_s14, %s1561_s6  ;;  %p1569_p12 = scmp.lt.s32.totalorder %s212_s14, %s212_s14 }
  0x42   : > { %p1570_p0 = scmp.lt.s32.totalorder %s1561_s6, %s1561_s6 }
  0x43   : > { %p1564_p7 = pnand %p1562_p8, %p1518_p13 }
  0x44   : > { %p1571_p9 = por %p1570_p0, %p1569_p12 }
  0x45   : > { %p1565_p10 = pneg %p1564_p7 }
  0x47   : > { %p1572_p3 = pnand %p1571_p9, %p1565_p10 }
  0x49   : > { %1575 = shalt.err (!%p1572_p3)
}
  0x4a   : > { %s1685_s7 = smov [#allocation10]   ;;  %s1823_s9 = sadd.s32 1, %s1680_s21  }
  0x4b   : > { %1455 = dma.vmem_to_smem (!%p1779_p11), %s212_s14, 16, %s1685_s7, [#allocation11]  }
  0x4c   : > { %3031 = sst [smem:[#allocation24_spill]] %s1823_s9  ;;  %s28_s10 = ssub.s32 %s1680_s21, %s1823_s9 }
  0x4d   : > { %p29_p13 = scmp.eq.s32.totalorder %s28_s10, 0  ;;  %s31_s11 = sadd.s32 1, %s1676_s20 }
  0x4e   : > { %p38_p1 = scmp.ne.s32.totalorder %s1676_s20, %s1672_s19  ;;  %p39_p2 = scmp.eq.s32.totalorder %s1680_s21, 0 }
  0x4f   : > { %s1832_s8 = scalar_select %p29_p13, %s1676_s20, %s31_s11  }
  0x50   : > { %p40_p5 = por %p39_p2, %p38_p1  ;;  %p3033_p4 = scmp.eq.s32.totalorder %s1745_s22, 1 }
  0x51   : > { %3032 = sst [smem:[#allocation25_spill]] %s1832_s8  ;;  %p1468_p8 = scmp.lt.s32.totalorder %s1680_s21, 2 }
  0x52   : > { %p1836_p6 = por %p3033_p4, %p38_p1  ;;  %s222_s13 = sand.u32 1, %s1676_s20  }
  0x53   : > { %s1310_s15 = sshll.u32 %s222_s13, 6  ;;  %s1421_s14 = sshll.u32 %s1680_s21, 10 }
  0x54   : > { %s3034_s12 = scalar_select %p1836_p6, 1, 0 }
  0x55   : > { %s3036_s0 = sld [smem:[#allocation57_spill]]  ;;  %s226_s26 = scalar_lea.vmem [#allocation2], %s1310_s15 }
  0x56   : > { %3035 = sst [smem:[#allocation26_spill]] %s3034_s12  ;;  %s233_s27 = sshll.u32 %s226_s26, 4  ;;  %s1848_s27 = int_to_ptr.vmem [resolvable:$true] %s233_s27 }
  0x57   : > { %p1850_p11 = pnand %p1468_p8, %p40_p5  ;;  %s1854_s30 = scalar_lea.sflag [#allocation3], %s222_s13 }
  0x59   : > { %p1578_p10 = pneg %p1850_p11 }
  0x5b   : > { %s1846_s23 = scalar_lea.hbm %s3036_s0, %s1421_s14  ;;  %s1581_s11 = scalar_lea.hbm %s3036_s0, 2048 }
  0x5c   : > { %s1576_s6 = scalar_lea.hbm %s1846_s23, 1024  ;;  %p1582_p9 = scmp.lt.s32.totalorder %s1846_s23, %s3036_s0 }
  0x5d   : > { %p1577_p7 = scmp.ne.s32.totalorder %s1846_s23, %s1576_s6  ;;  %p1583_p3 = scmp.lt.s32.totalorder %s1581_s11, %s1576_s6 }
  0x5f   : > { %p1579_p12 = pnand %p1578_p10, %p1577_p7  ;;  %p1584_p13 = por %p1583_p3, %p1582_p9 }
  0x61   : > { %p1580_p0 = pneg %p1579_p12 }
  0x63   : > { %p1585_p1 = pnand %p1584_p13, %p1580_p0 }
  0x65   : > { %1588 = shalt.err (!%p1585_p1)
}
  0x66   : > { %s1589_s13 = scalar_lea.vmem %s1848_s27, 1024  ;;  %s1686_s16 = smov [#allocation2]  }
  0x67   : > { %p1590_p2 = scmp.ne.s32.totalorder %s1848_s27, %s1589_s13  ;;  %s1594_s17 = sshll.u32 %s1686_s16, 4  ;;  %s1595_s17 = int_to_ptr.vmem [resolvable:$false] %s1594_s17 }
  0x68   : > { %s1596_s26 = scalar_lea.vmem %s1595_s17, 2048  ;;  %p1597_p8 = scmp.lt.s32.totalorder %s1848_s27, %s1595_s17 }
  0x69   : > { %p1592_p5 = pnand %p1590_p2, %p1578_p10  ;;  %p1598_p7 = scmp.lt.s32.totalorder %s1596_s26, %s1589_s13 }
  0x6b   : > { %p1593_p4 = pneg %p1592_p5  ;;  %p1599_p12 = por %p1598_p7, %p1597_p8 }
  0x6d   : > { %p1600_p6 = pnand %p1599_p12, %p1593_p4 }
  0x6f   : > { %1603 = shalt.err (!%p1600_p6)
}
  0x70   : > { %s1687_s6 = smov 128   ;;  %s1688_s7 = smov 8  }
  0x71   : > { %1459 = dma.hbm_to_vmem [thread:$0]  (!%p1850_p11), %s1846_s23, 1024, %s1848_s27, %s1854_s30, %s1687_s6, %s1687_s6, %s1688_s7  }
  0x72   : > { %p3038_p10 = scmp.ne.s32.totalorder %s3026_s29, 0 }
  0x74   : > { %245 = sbr.rel (%p3038_p10) target bundleno = 392 (0x188), region = 40 }
  0x79   : > { %s1878_s10 = sand.u32 1, %s1672_s19   ;;  %p3040_p6 = scmp.ne.s32.totalorder %s3022_s24, 0 }
  0x7a   : > { %3039 = sst [smem:[#allocation27_spill]] %s1878_s10  ;;  %s1314_s11 = sshll.u32 %s1878_s10, 6 }
  0x7b   : > { %s248_s15 = scalar_lea.sflag [#allocation3], %s1878_s10  ;;  %s1882_s14 = scalar_lea.vmem [#allocation2], %s1314_s11 }
  0x7c   : > { %1647 = dma.done.wait (%p3040_p6), %s248_s15, 1024  }
  0x7d   : > { %1649 = vsyncadd (%p3040_p6), %s248_s15, 4294966272  ;;  %p3041_p11 = scmp.eq.s32.totalorder %s1745_s22, 0 }
  0x7f   : > { %1651 = dma.done.wait (%p3041_p11), [#allocation5], 16   ;;  %p3042_p0 = pmov %p3041_p11 }
  0x81   : > { %1653 = vsyncadd (%p3042_p0), [#allocation5], 4294967280  ;;  %p3043_p9 = pmov %p3042_p0 }
  0x82   : > { %p3044_p3 = pmov %p3042_p0 }
  0x83   : > { %1655 = dma.done.wait (%p3043_p9), [#allocation8], 32  }
  0x84   : > { %1657 = vsyncadd (%p3044_p3), [#allocation8], 4294967264  ;;  %p3045_p13 = pmov %p3042_p0 }
  0x85   : > { %p3046_p1 = pmov %p3042_p0 }
  0x86   : > { %1659 = dma.done.wait (%p3045_p13), [#allocation11], 16  }
  0x87   : > { %1661 = vsyncadd (%p3046_p1), [#allocation11], 4294967280 }
  0x88   : > { %272 = sfence }
  0x89   : > { %vm299_vm0 = vcmask 1040384   ;;  %v1328_v0 = vld [vmem:[%s1882_s14 + $0x10] sm:$0xff]  ;;  %v295_v1 = vld [vmem:[%s1882_s14] sm:$0xff]  ;;  %v1329_v2 = vld [vmem:[%s1882_s14 + $0x18] sm:$0xff]  ;;  %s1689_s24 = smov 1   ;;  %s1334_s29 = sld [smem:[#allocation6 + $0xd]] }
  0x8a   : > { %v465_v3 = vrot.slane %v1328_v0, 7  ;;  %v300_v4 = vrot.slane %v295_v1, 7  ;;  %v466_v5 = vrot.slane %v1329_v2, 7  ;;  %v296_v6 = vld [vmem:[%s1882_s14 + $0x8] sm:$0xff]  ;;  %s1337_s23 = sld [smem:[#allocation6 + $0x10]]  ;;  %v1340_v12 = vld [vmem:[%s1882_s14 + $0x20] sm:$0xff] }
  0x8b   : > { %v301_v7 = vrot.slane %v296_v6, 7  ;;  %s1323_s27 = sld [smem:[#allocation6 + $0x4]]  ;;  %v1341_v13 = vld [vmem:[%s1882_s14 + $0x28] sm:$0xff]  ;;  %v626_v16 = vrot.slane %v1340_v12, 7  ;;  %s1690_s16 = smov 127   ;;  %v1352_v50 = vld [vmem:[%s1882_s14 + $0x30] sm:$0xff] }
  0x8c   : > { %v1905_v8 = vsel %vm299_vm0, 0.0, %v465_v3  ;;  %v1908_v9 = vsel %vm299_vm0, 0.0, %v300_v4  ;;  %v1915_v10 = vsel %vm299_vm0, %v465_v3, %v466_v5  ;;  %s1326_s28 = sld [smem:[#allocation6 + $0x7]]  ;;  %v1927_v14 = vsel %vm299_vm0, %v466_v5, 0.0  ;;  %v1353_v60 = vld [vmem:[%s1882_s14 + $0x38] sm:$0xff] }
  0x8d   : > { %475 = vrot.lane.b32.xlu1 %v1905_v8, %s1689_s24  ;;  %310 = vrot.lane.b32.xlu0 %v1908_v9, %s1689_s24  ;;  %v1918_v11 = vsel %vm299_vm0, %v300_v4, %v301_v7  ;;  %s1346_s30 = sld [smem:[#allocation6 + $0x16]]  ;;  %v1930_v15 = vsel %vm299_vm0, %v301_v7, 0.0  ;;  %v627_v17 = vrot.slane %v1341_v13, 7  ;;  %v1940_v22 = vsel %vm299_vm0, 0.0, %v626_v16 }
  0x8e   : > { %s1349_s13 = sld [smem:[#allocation6 + $0x19]]  ;;  %vm360_vm1 = vcmask 1046528   ;;  %v787_v58 = vrot.slane %v1352_v50, 7  ;;  %vm412_vm2 = vcmask 1045504   ;;  %v788_v6 = vrot.slane %v1353_v60, 7 }
  0x8f   : > { %v533_v18 = vstv %s1334_s29  ;;  %v1937_v21 = vsel %vm299_vm0, %v626_v16, %v627_v17  ;;  %v1950_v25 = vsel %vm299_vm0, %v627_v17, 0.0  ;;  %s1358_s17 = sld [smem:[#allocation6 + $0x1f]]  ;;  %vm319_vm3 = vcmask 7168  }
  0x90   : > { %v534_v23 = vmul.f32 %v533_v18, %v1905_v8  ;;  %v1943_v24 = vstv %s1337_s23  ;;  %v536_v27 = vmul.f32 %v533_v18, %v1927_v14  ;;  %v535_v31 = vmul.f32 %v533_v18, %v1915_v10  ;;  %s1361_s26 = sld [smem:[#allocation6 + $0x22]] }
  0x91   : > { %477 = vrot.lane.b32.xlu1 %v1915_v10, %s1689_s24  ;;  %312 = vrot.lane.b32.xlu0 %v1918_v11, %s1689_s24  ;;  %v371_v19 = vstv %s1323_s27  ;;  %v585_v35 = vmul.f32 %v1943_v24, %v1905_v8  ;;  %v1965_v36 = vmul.f32 %v1943_v24, %v1915_v10  ;;  %v2022_v5 = vsel %vm299_vm0, 0.0, %v787_v58  ;;  %s2062_s6 = sld [smem:[#allocation6 + $0x9]] }
  0x92   : > { %v423_v20 = vstv %s1326_s28  ;;  %v374_v28 = vmul.f32 %v371_v19, %v1930_v15  ;;  %v373_v29 = vmul.f32 %v371_v19, %v1918_v11  ;;  %v372_v32 = vmul.f32 %v371_v19, %v1908_v9  ;;  %s2067_s7 = sld [smem:[#allocation6 + $0xa]] }
  0x93   : > { %v694_v26 = vstv %s1346_s30  ;;  %v424_v33 = vmul.f32 %v423_v20, %v1908_v9  ;;  %v425_v34 = vmul.f32 %v423_v20, %v1918_v11  ;;  %v540_v42 = vrot.slane %v534_v23, 1  ;;  %s2069_s11 = sld [smem:[#allocation6 + $0xc]] }
  0x94   : > { %v1955_v30 = vstv %s1349_s13  ;;  %v695_v37 = vmul.f32 %v694_v26, %v1940_v22  ;;  %v696_v38 = vmul.f32 %v694_v26, %v1937_v21  ;;  %v697_v39 = vmul.f32 %v694_v26, %v1950_v25  ;;  %s2073_s15 = sld [smem:[#allocation6 + $0xf]] }
  0x95   : > { %479 = vrot.lane.b32.xlu1 %v1927_v14, %s1689_s24  ;;  %314 = vrot.lane.b32.xlu0 %v1930_v15, %s1689_s24  ;;  %v746_v40 = vmul.f32 %v1955_v30, %v1940_v22  ;;  %v1978_v41 = vmul.f32 %v1955_v30, %v1937_v21  ;;  %v543_v43 = vrot.slane %v536_v27, 1  ;;  %v381_v44 = vrot.slane %v374_v28, 1  ;;  %s2075_s14 = sld [smem:[#allocation6]] }
  0x96   : > { %v379_v45 = vrot.slane %v373_v29, 1  ;;  %v541_v46 = vrot.slane %v535_v31, 1  ;;  %v378_v47 = vrot.slane %v372_v32, 1  ;;  %v430_v48 = vrot.slane %v424_v33, 2  ;;  %s2082_s29 = sld [smem:[#allocation6 + $0x3]] }
  0x97   : > { %v431_v49 = vrot.slane %v425_v34, 2  ;;  %v591_v51 = vrot.slane %v585_v35, 2  ;;  %v592_v52 = vrot.slane %v1965_v36, 2  ;;  %v701_v53 = vrot.slane %v695_v37, 1  ;;  %3047 = sst [smem:[#allocation28_spill]] %s2062_s6 }
  0x98   : > { %v702_v54 = vrot.slane %v696_v38, 1  ;;  %v704_v55 = vrot.slane %v697_v39, 1  ;;  %v752_v56 = vrot.slane %v746_v40, 2  ;;  %v753_v57 = vrot.slane %v1978_v41, 2  ;;  %s2084_s23 = sld [smem:[#allocation6 + $0x6]] }
  0x99   : > { %325 = vrot.lane.b32.xlu1 %v1918_v11, %s1690_s16  ;;  %323 = vrot.lane.b32.xlu0 %v1908_v9, %s1690_s16  ;;  %v1988_v59 = vsel %vm360_vm1, %v379_v45, %v381_v44  ;;  %v1992_v61 = vsel %vm360_vm1, %v378_v47, %v379_v45  ;;  %v1995_v62 = vsel %vm412_vm2, %v430_v48, %v431_v49  ;;  %v794_v17 = vsel %vm299_vm0, %v788_v6, 0.0  ;;  %s2086_s27 = sld [smem:[#allocation6 + $0x2]] }
  0x9a   : > { %v1998_v63 = vsel %vm360_vm1, %v541_v46, %v543_v43  ;;  %v2001_v0 = vsel %vm360_vm1, %v540_v42, %v541_v46  ;;  %v2004_v1 = vsel %vm412_vm2, %v591_v51, %v592_v52  ;;  %v2007_v2 = vsel %vm360_vm1, %v701_v53, %v702_v54  ;;  %s2088_s28 = sld [smem:[#allocation6 + $0x5]] }
  0x9b   : > { %v2014_v3 = vsel %vm360_vm1, %v702_v54, %v704_v55  ;;  %v2019_v4 = vsel %vm412_vm2, %v752_v56, %v753_v57  ;;  %v426_v7 = vmul.f32 %v423_v20, %v1930_v15  ;;  %v2030_v12 = vsel %vm299_vm0, %v787_v58, %v788_v6  ;;  %3048 = sst [smem:[#allocation29_spill]] %s2075_s14 }
  0x9c   : > { %v587_v16 = vmul.f32 %v1943_v24, %v1927_v14  ;;  %v855_v20 = vstv %s1358_s17  ;;  %v748_v38 = vmul.f32 %v1955_v30, %v1950_v25  ;;  %s2090_s30 = sld [smem:[#allocation6 + $0x8]]  ;;  %v504_v41 = vstv %s2067_s7 }
  0x9d   : > { %489 = vrot.lane.b32.xlu1 %v1915_v10, %s1690_s16  ;;  %487 = vrot.lane.b32.xlu0 %v1905_v8, %s1690_s16  ;;  %v433_v13 = vrot.slane %v426_v7, 2  ;;  %v857_v23 = vmul.f32 %v855_v20, %v2030_v12  ;;  %v858_v24 = vmul.f32 %v855_v20, %v794_v17  ;;  %v856_v26 = vmul.f32 %v855_v20, %v2022_v5  ;;  %s2095_s13 = sld [smem:[#allocation6 + $0xb]] }
  0x9e   : > { %v594_v19 = vrot.slane %v587_v16, 2  ;;  %v755_v42 = vrot.slane %v748_v38, 2  ;;  %s2104_s17 = sld [smem:[#allocation6 + $0x11]]  ;;  %v500_v44 = vstv %s2062_s6  ;;  %v2182_v45 = vstv %s2069_s11 }
  0x9f   : > { %v2040_v18 = vsel %vm412_vm2, %v431_v49, %v433_v13  ;;  %v863_v27 = vrot.slane %v857_v23, 1  ;;  %v865_v28 = vrot.slane %v858_v24, 1  ;;  %v862_v29 = vrot.slane %v856_v26, 1  ;;  %3050 = sst [smem:[#allocation31_spill]] %s2086_s27 }
  0xa0   : > { %v2100_v30 = vsel %vm412_vm2, %v753_v57, %v755_v42  ;;  %s2108_s0 = sld [smem:[#allocation6 + $0x13]]  ;;  %v2185_v46 = vstv %s2073_s15  ;;  %v2188_v47 = vmul.f32 %v504_v41, %v1905_v8  ;;  %v337_v48 = vstv %s2075_s14 }
  0xa1   : > { %638 = vrot.lane.b32.xlu1 %v1937_v21, %s1689_s24  ;;  %636 = vrot.lane.b32.xlu0 %v1940_v22, %s1689_s24  ;;  %v2060_v33 = vsel %vm360_vm1, %v863_v27, %v865_v28  ;;  %v2065_v34 = vsel %vm360_vm1, %v862_v29, %v863_v27  ;;  %3052 = vst [vmem:[#allocation33_spill] sm:$0xff] %v2100_v30  ;;  %s2110_s1 = sld [smem:[#allocation6 + $0x15]]  ;;  %v2194_v49 = vstv %s2082_s29  ;;  %v2197_v50 = vstv %s2084_s23 }
  0xa2   : > { %s2112_s2 = sld [smem:[#allocation6 + $0x18]]  ;;  %v2212_v54 = vstv %s2088_s28  ;;  %vm332_vm4 = vcmask 121856   ;;  %vm969_vm5 = vcmask 130048  }
  0xa3   : > { %3051 = sst [smem:[#allocation32_spill]] %s2095_s13 }
  0xa4   : > { %s2114_s3 = sld [smem:[#allocation6 + $0x14]] }
  0xa5   : > { %648 = vrot.lane.b32.xlu1 %v1940_v22, %s1690_s16  ;;  %640 = vrot.lane.b32.xlu0 %v1950_v25, %s1689_s24  ;;  %s2116_s4 = sld [smem:[#allocation6 + $0x17]] }
  0xa6   : > { %s2118_s8 = sld [smem:[#allocation6 + $0x1a]]  ;;  %v665_v55 = vstv %s2108_s0 }
  0xa7   : > { %s2120_s20 = sld [smem:[#allocation6 + $0x1b]]  ;;  %v2232_v60 = vmul.f32 %v665_v55, %v1937_v21  ;;  %v2235_v6 = vstv %s2110_s1  ;;  %v2243_v13 = vmul.f32 %v665_v55, %v1940_v22 }
  0xa8   : > { %s2122_s19 = sld [smem:[#allocation6 + $0x1c]]  ;;  %v2240_v7 = vstv %s2112_s2 }
  0xa9   : > { %797 = vrot.lane.b32.xlu1 %v2022_v5, %s1689_s24  ;;  %650 = vrot.lane.b32.xlu0 %v1937_v21, %s1690_s16  ;;  %s2124_s9 = sld [smem:[#allocation6 + $0x1e]] }
  0xaa   : > { %3054 = sst [smem:[#allocation35_spill]] %s2114_s3 }
  0xab   : > { %s2126_s21 = sld [smem:[#allocation6 + $0x21]] }
  0xac   : > { %3055 = sst [smem:[#allocation36_spill]] %s2118_s8 }
  0xad   : > { %327 = vrot.lane.b32.xlu1 %v1930_v15, %s1690_s16  ;;  %799 = vrot.lane.b32.xlu0 %v2030_v12, %s1689_s24  ;;  %v2050_v15 = vsel %vm412_vm2, %v592_v52, %v594_v19  ;;  %3056 = sst [smem:[#allocation37_spill]] %s2120_s20  ;;  %v2203_v52 = vmul.f32 %v504_v41, %v1915_v10 }
  0xae   : > { %s2128_s25 = sld [smem:[#allocation7]]  ;;  %v826_v57 = vstv %s2122_s19 }
  0xaf   : > { %3057 = sst [smem:[#allocation38_spill]] %s2124_s9  ;;  %v2256_v20 = vmul.f32 %v826_v57, %v2022_v5 }
  0xb0   : > { %s2130_s18 = sld [smem:[#allocation9]] }
  0xb1   : > { %801 = vrot.lane.b32.xlu1 %v794_v17, %s1689_s24  ;;  %491 = vrot.lane.b32.xlu0 %v1927_v14, %s1690_s16  ;;  %v906_v14 = vstv %s1361_s26  ;;  %s2077_s24 = sld [smem:[#allocation6 + $0x1]] }
  0xb2   : > { %v907_v31 = vmul.f32 %v906_v14, %v2022_v5  ;;  %v908_v32 = vmul.f32 %v906_v14, %v2030_v12  ;;  %v909_v37 = vmul.f32 %v906_v14, %v794_v17  ;;  %s2106_s26 = sld [smem:[#allocation6 + $0x12]]  ;;  %v2269_v14 = vmul.f32 %v826_v57, %v2030_v12 }
  0xb3   : > { %3058 = sst [smem:[#allocation39_spill]] %s2126_s21 }
  0xb4   : > { %v913_v35 = vrot.slane %v907_v31, 2  ;;  %v914_v36 = vrot.slane %v908_v32, 2  ;;  %v916_v40 = vrot.slane %v909_v37, 2  ;;  %3059 = sst [smem:[#allocation40_spill]] %s2128_s25 }
  0xb5   : > { %811 = vrot.lane.b32.xlu1 %v2030_v12, %s1690_s16  ;;  %809 = vrot.lane.b32.xlu0 %v2022_v5, %s1690_s16  ;;  %s2132_s12 = sld [smem:[#allocation9 + $0x4]] }
  0xb6   : > { %v2080_v39 = vsel %vm412_vm2, %v913_v35, %v914_v36  ;;  %3060 = sst [smem:[#allocation41_spill]] %s2130_s18 }
  0xb7   : > { %3049 = vst [vmem:[#allocation30_spill] sm:$0xff] %v2080_v39  ;;  %s2134_s5 = sld [smem:[#allocation9 + $0x8]]  ;;  %v341_v43 = vstv %s2077_s24 }
  0xb8   : > { %3053 = sst [smem:[#allocation34_spill]] %s2106_s26  ;;  %v2200_v51 = vmul.f32 %v341_v43, %v1908_v9  ;;  %v2208_v8 = vmul.f32 %v341_v43, %v1918_v11  ;;  %v2218_v9 = vstv %s2090_s30  ;;  %v2228_v11 = vstv %s2104_s17 }
  0xb9   : > { %813 = vrot.lane.b32.xlu1 %v794_v17, %s1690_s16  ;;  %652 = vrot.lane.b32.xlu0 %v1950_v25, %s1690_s16  ;;  %v2093_v25 = vsel %vm412_vm2, %v914_v36, %v916_v40  ;;  %s2102_s16 = sld [smem:[#allocation6 + $0xe]]  ;;  %v2247_v17 = vstv %s2116_s4 }
  0xba   : > { %s2136_s22 = sld [smem:[#allocation9 + $0xc]] }
  0xbb   : > { %3061 = sst [smem:[#allocation42_spill]] %s2132_s12 }
  0xbc   : > { %s2138_s10 = sld [smem:[#allocation9 + $0x10]] }
  0xbd   : > { %3062 = sst [smem:[#allocation43_spill]] %s2134_s5 }
  0xbe   : > { %s2140_s8 = sld [smem:[#allocation9 + $0x14]] }
  0xbf   : > { %s2142_s20 = sld [smem:[#allocation9 + $0x18]]  ;;  %v2222_v56 = vstv %s2102_s16 }
  0xc0   : > { %3063 = sst [smem:[#allocation44_spill]] %s2136_s22 }
  0xc1   : > { %s2144_s9 = sld [smem:[#allocation9 + $0x1c]] }
  0xc2   : > { %3064 = sst [smem:[#allocation45_spill]] %s2138_s10 }
  0xc3   : > { %s2146_s21 = sld [smem:[#allocation7 + $0x1]] }
  0xc4   : > { %3065 = sst [smem:[#allocation46_spill]] %s2140_s8 }
  0xc5   : > { %3066 = sst [smem:[#allocation47_spill]] %s2142_s20 }
  0xc6   : > { %s2148_s25 = sld [smem:[#allocation9 + $0x1]] }
  0xc7   : > { %3067 = sst [smem:[#allocation48_spill]] %s2144_s9 }
  0xc8   : > { %s2150_s12 = sld [smem:[#allocation9 + $0x5]] }
  0xc9   : > { %3068 = sst [smem:[#allocation49_spill]] %s2146_s21 }
  0xca   : > { %s2152_s5 = sld [smem:[#allocation9 + $0x9]] }
  0xcb   : > { %s2154_s22 = sld [smem:[#allocation9 + $0xd]] }
  0xcc   : > { %3069 = sst [smem:[#allocation50_spill]] %s2148_s25 }
  0xcd   : > { %s2156_s8 = sld [smem:[#allocation9 + $0x11]] }
  0xce   : > { %3070 = sst [smem:[#allocation51_spill]] %s2150_s12 }
  0xcf   : > { %s2158_s10 = sld [smem:[#allocation9 + $0x15]] }
  0xd0   : > { %3071 = sst [smem:[#allocation52_spill]] %s2152_s5 }
  0xd1   : > { %3072 = sst [smem:[#allocation53_spill]] %s2154_s22 }
  0xd2   : > { %s2160_s9 = sld [smem:[#allocation9 + $0x19]] }
  0xd3   : > { %s2162_s20 = sld [smem:[#allocation9 + $0x1d]] }
  0xd4   : > { %s2164_s25 = sld [smem:[#allocation6 + $0x1d]] }
  0xd5   : > { %3073 = sst [smem:[#allocation54_spill]] %s2158_s10 }
  0xd6   : > { %s2166_s12 = sld [smem:[#allocation6 + $0x20]] }
  0xd7   : > { %s2168_s5 = sld [smem:[#allocation6 + $0x23]] }
  0xd8   : > { %s2170_s21 = sld [smem:[#allocation7 + $0x2]] }
  0xd9   : > { %3074 = sst [smem:[#allocation55_spill]] %s2162_s20 }
  0xda   : > { %3075 = sst [smem:[#allocation56_spill]] %s2164_s25 }
  0xdb   : > { %s2173_s22 = sld [smem:[#allocation9 + $0x2]] }
  0xdc   : > { %s2176_s10 = sld [smem:[#allocation9 + $0x6]]  ;;  %v2297_v37 = vstv %s2166_s12 }
  0xdd   : > { %s2179_s20 = sld [smem:[#allocation9 + $0xa]]  ;;  %v2300_v38 = vstv %s2168_s5 }
  0xde   : > { %s2191_s7 = sld [smem:[#allocation9 + $0xe]] }
  0xdf   : > { %s2205_s11 = sld [smem:[#allocation9 + $0x12]] }
  0xe0   : > { %s2215_s15 = sld [smem:[#allocation9 + $0x16]] }
  0xe1   : > { %s3076_s24 = sld [smem:[#allocation36_spill]] }
  0xe2   : > { %s3078_s23 = sld [smem:[#allocation38_spill]] }
  0xe3   : > { %s2225_s14 = sld [smem:[#allocation9 + $0x1a]] }
  0xe4   : > { %s3080_s27 = sld [smem:[#allocation39_spill]] }
  0xe5   : > { %s3081_s28 = sld [smem:[#allocation40_spill]] }
  0xe6   : > { %s2237_s0 = sld [smem:[#allocation7 + $0x3]] }
  0xe7   : > { %s3083_s30 = sld [smem:[#allocation42_spill]]  ;;  %v2252_v21 = vstv %s3076_s24 }
  0xe8   : > { %s3084_s19 = sld [smem:[#allocation43_spill]]  ;;  %v2259_v23 = vstv %s3078_s23 }
  0xe9   : > { %3079 = sst [smem:[#allocation36_spill]] %s2225_s14 }
  0xea   : > { %s3085_s16 = sld [smem:[#allocation44_spill]]  ;;  %v2264_v22 = vstv %s3080_s27 }
  0xeb   : > { %s2249_s26 = sld [smem:[#allocation9 + $0x1e]] }
  0xec   : > { %3082 = sst [smem:[#allocation38_spill]] %s2237_s0 }
  0xed   : > { %s3088_s13 = sld [smem:[#allocation46_spill]] }
  0xee   : > { %s3089_s1 = sld [smem:[#allocation47_spill]] }
  0xef   : > { %s2261_s6 = sld [smem:[#allocation9 + $0x3]] }
  0xf0   : > { %s3095_s24 = sld [smem:[#allocation53_spill]] }
  0xf1   : > { %3087 = sst [smem:[#allocation39_spill]] %s2249_s26 }
  0xf2   : > { %s3094_s26 = sld [smem:[#allocation52_spill]] }
  0xf3   : > { %s2271_s29 = sld [smem:[#allocation9 + $0x7]] }
  0xf4   : > { %s3096_s14 = sld [smem:[#allocation54_spill]] }
  0xf5   : > { %s3097_s23 = sld [smem:[#allocation55_spill]] }
  0xf6   : > { %s2277_s27 = sld [smem:[#allocation9 + $0xb]] }
  0xf7   : > { %s2283_s18 = sld [smem:[#allocation9 + $0xf]] }
  0xf8   : > { %s2289_s17 = sld [smem:[#allocation9 + $0x13]] }
  0xf9   : > { %s3100_s0 = sld [smem:[#allocation36_spill]] }
  0xfa   : > { %s3102_s3 = sld [smem:[#allocation38_spill]] }
  0xfb   : > { %s3103_s4 = sld [smem:[#allocation39_spill]] }
  0xfc   : > { %s3105_s5 = sld [smem:[#allocation31_spill]] }
  0xfd   : > { %3098 = sst [smem:[#allocation40_spill]] %s2283_s18 }
  0xfe   : > { %3099 = sst [smem:[#allocation42_spill]] %s2289_s17 }
  0xff   : > { %v476_v57 = vpop.permute.xlu1 %475  ;;  %v311_v35 = vpop.permute.xlu0 %310  ;;  %s3107_s25 = sld [smem:[#allocation32_spill]] }
 0x100   : > { %v484_v12 = vsel %vm319_vm3, 0.0, %v476_v57  ;;  %v320_v28 = vsel %vm319_vm3, 0.0, %v311_v35  ;;  %s3111_s12 = sld [smem:[#allocation34_spill]] }
 0x101   : > { %v501_v29 = vmul.f32 %v500_v44, %v484_v12  ;;  %v517_v42 = vmul.f32 %v2182_v45, %v484_v12  ;;  %v568_v41 = vmul.f32 %v2185_v46, %v484_v12  ;;  %v338_v35 = vmul.f32 %v337_v48, %v320_v28  ;;  %s3113_s2 = sld [smem:[#allocation35_spill]] }
 0x102   : > { %v354_v40 = vmul.f32 %v2194_v49, %v320_v28  ;;  %v406_v55 = vmul.f32 %v2197_v50, %v320_v28  ;;  %s3132_s17 = sld [smem:[#allocation50_spill]] }
 0x103   : > { %v478_v43 = vpop.permute.xlu1 %477  ;;  %v313_v27 = vpop.permute.xlu0 %312  ;;  %v2330_v12 = vadd.f32 %v2188_v47, %v501_v29  ;;  %v574_v5 = vrot.slane %v568_v41, 2  ;;  %s3133_s18 = sld [smem:[#allocation51_spill]] }
 0x104   : > { %v485_v31 = vsel %vm319_vm3, 0.0, %v478_v43  ;;  %v321_v36 = vsel %vm319_vm3, 0.0, %v313_v27  ;;  %v523_v27 = vrot.slane %v517_v42, 1  ;;  %v361_v41 = vrot.slane %v354_v40, 1 }
 0x105   : > { %v569_v57 = vmul.f32 %v2185_v46, %v485_v31  ;;  %v355_v32 = vmul.f32 %v2194_v49, %v321_v36  ;;  %v407_v43 = vmul.f32 %v2197_v50, %v321_v36  ;;  %v502_v26 = vmul.f32 %v500_v44, %v485_v31 }
 0x106   : > { %v518_v19 = vmul.f32 %v2182_v45, %v485_v31  ;;  %v339_v24 = vmul.f32 %v337_v48, %v321_v36  ;;  %v344_v44 = vadd.f32 %v2200_v51, %v338_v35  ;;  %v413_v39 = vrot.slane %v406_v55, 2 }
 0x107   : > { %v480_v16 = vpop.permute.xlu1 %479  ;;  %v315_v58 = vpop.permute.xlu0 %314  ;;  %v575_v10 = vrot.slane %v569_v57, 2  ;;  %v414_v28 = vrot.slane %v407_v43, 2  ;;  %v362_v31 = vrot.slane %v355_v32, 1  ;;  %v508_v48 = vadd.f32 %v2203_v52, %v502_v26 }
 0x108   : > { %v486_v47 = vsel %vm319_vm3, 0.0, %v480_v16  ;;  %v322_v29 = vsel %vm319_vm3, 0.0, %v315_v58  ;;  %v524_v16 = vrot.slane %v518_v19, 1  ;;  %v3106_v55 = vstv %s3105_s5  ;;  %s3116_s5 = sld [smem:[#allocation37_spill]] }
 0x109   : > { %v519_v53 = vmul.f32 %v2182_v45, %v486_v47  ;;  %v570_v30 = vmul.f32 %v2185_v46, %v486_v47  ;;  %v356_v42 = vmul.f32 %v2194_v49, %v322_v29  ;;  %v408_v57 = vmul.f32 %v2197_v50, %v322_v29 }
 0x10a   : > { %v345_v45 = vadd.f32 %v2208_v8, %v339_v24  ;;  %v2352_v40 = vsel %vm412_vm2, %v574_v5, %v575_v10  ;;  %v415_v50 = vsel %vm412_vm2, %v413_v39, %v414_v28  ;;  %v363_v8 = vsel %vm360_vm1, %v361_v41, %v362_v31 }
 0x10b   : > { %v526_v58 = vrot.slane %v519_v53, 1  ;;  %v326_v36 = vpop.permute.xlu1 %325  ;;  %v324_v43 = vpop.permute.xlu0 %323  ;;  %v364_v46 = vrot.slane %v356_v42, 1  ;;  %v577_v32 = vrot.slane %v570_v30, 2  ;;  %v416_v26 = vrot.slane %v408_v57, 2 }
 0x10c   : > { %v334_v49 = vsel %vm332_vm4, %v326_v36, 0.0  ;;  %v333_v51 = vsel %vm332_vm4, %v324_v43, 0.0  ;;  %v3108_v19 = vmov %v3106_v55  ;;  %v525_v39 = vsel %vm360_vm1, %v523_v27, %v524_v16 }
 0x10d   : > { %v349_v52 = vmul.f32 %v3106_v55, %v334_v49  ;;  %v2358_v53 = vmul.f32 %v2212_v54, %v334_v49  ;;  %v348_v24 = vmul.f32 %v3108_v19, %v333_v51  ;;  %v527_v35 = vsel %vm360_vm1, %v524_v16, %v526_v58 }
 0x10e   : > { %v389_v5 = vmul.f32 %v2212_v54, %v333_v51  ;;  %v365_v42 = vsel %vm360_vm1, %v362_v31, %v364_v46  ;;  %v2370_v41 = vsel %vm412_vm2, %v575_v10, %v577_v32  ;;  %v2375_v19 = vsel %vm412_vm2, %v414_v28, %v416_v26 }
 0x10f   : > { %v351_v47 = vadd.f32 %v349_v52, %v345_v45  ;;  %v490_v29 = vpop.permute.xlu1 %489  ;;  %v488_v30 = vpop.permute.xlu0 %487  ;;  %v396_v57 = vrot.slane %v2358_v53, 1  ;;  %v350_v36 = vadd.f32 %v348_v24, %v344_v44  ;;  %v3109_v45 = vstv %s3107_s25  ;;  %s3119_s25 = sld [smem:[#allocation41_spill]] }
 0x110   : > { %v497_v43 = vsel %vm332_vm4, %v490_v29, 0.0  ;;  %v395_v58 = vrot.slane %v389_v5, 1  ;;  %v2378_v27 = vmul.f32 %v2218_v9, %v334_v49  ;;  %v496_v16 = vsel %vm332_vm4, %v488_v30, 0.0 }
 0x111   : > { %v369_v55 = vadd.f32 %v365_v42, %v351_v47  ;;  %v512_v52 = vmul.f32 %v3109_v45, %v497_v43  ;;  %v368_v31 = vadd.f32 %v363_v8, %v350_v36  ;;  %v441_v10 = vmul.f32 %v2218_v9, %v333_v51 }
 0x112   : > { %v2386_v32 = vmul.f32 %v2222_v56, %v497_v43  ;;  %v397_v49 = vsel %vm360_vm1, %v395_v58, %v396_v57  ;;  %v2393_v26 = vmul.f32 %v2228_v11, %v497_v43  ;;  %v3110_v8 = vmov %v3109_v45 }
 0x113   : > { %v2382_v44 = vadd.f32 %v1988_v59, %v369_v55  ;;  %v514_v46 = vadd.f32 %v512_v52, %v508_v48  ;;  %v639_v24 = vpop.permute.xlu1 %638  ;;  %v637_v47 = vpop.permute.xlu0 %636  ;;  %v385_v28 = vadd.f32 %v1992_v61, %v368_v31  ;;  %v511_v59 = vmul.f32 %v3110_v8, %v496_v16 }
 0x114   : > { %v551_v51 = vmul.f32 %v2222_v56, %v496_v16  ;;  %v602_v48 = vmul.f32 %v2228_v11, %v496_v16  ;;  %v646_v29 = vsel %vm319_vm3, 0.0, %v639_v24  ;;  %v448_v30 = vrot.slane %v2378_v27, 2 }
 0x115   : > { %v531_v5 = vadd.f32 %v527_v35, %v514_v46  ;;  %v402_v61 = vadd.f32 %v397_v49, %v385_v28  ;;  %v513_v42 = vadd.f32 %v511_v59, %v2330_v12  ;;  %v679_v36 = vmul.f32 %v2235_v6, %v646_v29 }
 0x116   : > { %v447_v55 = vrot.slane %v441_v10, 2  ;;  %v3003_v35 = vrot.slane %v2386_v32, 1  ;;  %v557_v58 = vrot.slane %v551_v51, 1  ;;  %v609_v16 = vrot.slane %v2393_v26, 2 }
 0x117   : > { %v2404_v43 = vadd.f32 %v1998_v63, %v531_v5  ;;  %v649_v45 = vpop.permute.xlu1 %648  ;;  %v641_v52 = vpop.permute.xlu0 %640  ;;  %v420_v31 = vadd.f32 %v415_v50, %v402_v61  ;;  %v530_v46 = vadd.f32 %v525_v39, %v513_v42  ;;  %v2409_v24 = vmul.f32 %v2240_v7, %v646_v29 }
 0x118   : > { %v608_v12 = vrot.slane %v602_v48, 2  ;;  %v3112_v28 = vstv %s3111_s12  ;;  %v685_v10 = vrot.slane %v679_v36, 1  ;;  %v645_v8 = vsel %vm319_vm3, 0.0, %v637_v47  ;;  %s3122_s12 = sld [smem:[#allocation45_spill]] }
 0x119   : > { %v663_v49 = vmul.f32 %v3112_v28, %v646_v29  ;;  %v437_v63 = vadd.f32 %v1995_v62, %v420_v31  ;;  %v547_v59 = vadd.f32 %v2001_v0, %v530_v46  ;;  %v3114_v5 = vmov %v3112_v28 }
 0x11a   : > { %v662_v51 = vmul.f32 %v3114_v5, %v645_v8  ;;  %v678_v50 = vmul.f32 %v2235_v6, %v645_v8  ;;  %v559_v39 = vsel %vm360_vm1, %v557_v58, %v3003_v35  ;;  %v729_v48 = vmul.f32 %v2240_v7, %v645_v8 }
 0x11b   : > { %v657_v29 = vsel %vm332_vm4, %v649_v45, 0.0  ;;  %v647_v61 = vsel %vm319_vm3, 0.0, %v641_v52  ;;  %v798_v47 = vpop.permute.xlu1 %797  ;;  %v449_v62 = vsel %vm412_vm2, %v447_v55, %v448_v30  ;;  %v564_v0 = vadd.f32 %v559_v39, %v547_v59  ;;  %v651_v31 = vpop.permute.xlu0 %650 }
 0x11c   : > { %v3009_v42 = vrot.slane %v2409_v24, 2  ;;  %v684_v36 = vrot.slane %v678_v50, 1  ;;  %v668_v46 = vadd.f32 %v2243_v13, %v662_v51  ;;  %v735_v28 = vrot.slane %v729_v48, 2 }
 0x11d   : > { %v3115_v58 = vstv %s3113_s2  ;;  %v712_v8 = vmul.f32 %v2247_v17, %v657_v29  ;;  %v581_v45 = vadd.f32 %v2352_v40, %v564_v0  ;;  %v669_v52 = vadd.f32 %v2232_v60, %v663_v49 }
 0x11e   : > { %v672_v5 = vmul.f32 %v3115_v58, %v657_v29  ;;  %v763_v35 = vmul.f32 %v2252_v21, %v657_v29  ;;  %v680_v55 = vmul.f32 %v2235_v6, %v647_v61  ;;  %v454_v59 = vadd.f32 %v449_v62, %v437_v63 }
 0x11f   : > { %v610_v50 = vsel %vm412_vm2, %v608_v12, %v609_v16  ;;  %v686_v51 = vsel %vm360_vm1, %v684_v36, %v685_v10  ;;  %v598_v39 = vadd.f32 %v2004_v1, %v581_v45  ;;  %v2443_v58 = vmul.f32 %v2240_v7, %v647_v61  ;;  %v328_v29 = vpop.permute.xlu1 %327 }
 0x120   : > { %v674_v13 = vadd.f32 %v672_v5, %v668_v46  ;;  %v687_v48 = vrot.slane %v680_v55, 1  ;;  %v806_v60 = vsel %vm319_vm3, 0.0, %v798_v47  ;;  %v737_v6 = vsel %vm412_vm2, %v735_v28, %v3009_v42  ;;  %v800_v47 = vpop.permute.xlu0 %799 }
 0x121   : > { %v718_v49 = vrot.slane %v712_v8, 1  ;;  %v3117_v63 = vstv %s3116_s5  ;;  %v769_v62 = vrot.slane %v763_v35, 2  ;;  %v2452_v1 = vmul.f32 %v2259_v23, %v806_v60 }
 0x122   : > { %v691_v40 = vadd.f32 %v686_v51, %v674_v13  ;;  %v823_v12 = vmul.f32 %v3117_v63, %v806_v60  ;;  %v2455_v7 = vmul.f32 %v2264_v22, %v806_v60  ;;  %v658_v61 = vsel %vm332_vm4, %v651_v31, 0.0 }
 0x123   : > { %v615_v0 = vadd.f32 %v610_v50, %v598_v39  ;;  %v688_v46 = vsel %vm360_vm1, %v685_v10, %v687_v48  ;;  %v3118_v5 = vstv %s3113_s2  ;;  %v2466_v8 = vmul.f32 %v2247_v17, %v658_v61  ;;  %s3126_s2 = sld [smem:[#allocation49_spill]] }
 0x124   : > { %v708_v36 = vadd.f32 %v2007_v2, %v691_v40  ;;  %v2461_v28 = vadd.f32 %v2256_v20, %v823_v12  ;;  %v673_v35 = vmul.f32 %v3118_v5, %v658_v61  ;;  %v2469_v45 = vmul.f32 %v2252_v21, %v658_v61 }
 0x125   : > { %v335_v31 = vsel %vm332_vm4, %v328_v29, 0.0  ;;  %v3120_v55 = vstv %s3081_s28  ;;  %v807_v50 = vsel %vm319_vm3, 0.0, %v800_v47  ;;  %v845_v13 = vrot.slane %v2452_v1, 1 }
 0x126   : > { %v391_v2 = vmul.f32 %v2212_v54, %v335_v31  ;;  %v443_v10 = vmul.f32 %v2218_v9, %v335_v31  ;;  %v458_v20 = vadd.f32 %v3120_v55, %v454_v59  ;;  %v675_v51 = vadd.f32 %v673_v35, %v669_v52 }
 0x127   : > { %v3010_v39 = vrot.slane %v2466_v8, 1  ;;  %v3008_v48 = vrot.slane %v2469_v45, 2  ;;  %v896_v60 = vrot.slane %v2455_v7, 2  ;;  %v3121_v54 = vstv %s3116_s5  ;;  %s3128_s5 = sld [smem:[#allocation48_spill]] }
 0x128   : > { %v398_v40 = vrot.slane %v391_v2, 1  ;;  %v450_v63 = vrot.slane %v443_v10, 2  ;;  %v824_v9 = vmul.f32 %v3121_v54, %v807_v50  ;;  %v692_v59 = vadd.f32 %v688_v46, %v675_v51  ;;  %v802_v2 = vpop.permute.xlu1 %801 }
 0x129   : > { %v720_v12 = vsel %vm360_vm1, %v718_v49, %v3010_v39  ;;  %v3123_v52 = vstv %s3119_s25  ;;  %v3124_v61 = vstv %s3083_s30  ;;  %v771_v7 = vsel %vm412_vm2, %v769_v62, %v3008_v48 }
 0x12a   : > { %v945_v29 = vmul.f32 %v3123_v52, %v458_v20  ;;  %v974_v47 = vmul.f32 %v3124_v61, %v458_v20  ;;  %v725_v5 = vadd.f32 %v720_v12, %v708_v36  ;;  %v399_v35 = vsel %vm360_vm1, %v396_v57, %v398_v40 }
 0x12b   : > { %v3125_v31 = vstv %s3084_s19  ;;  %v2499_v10 = vadd.f32 %v2014_v3, %v692_v59  ;;  %v403_v49 = vadd.f32 %v399_v35, %v2382_v44  ;;  %v451_v36 = vsel %vm412_vm2, %v448_v30, %v450_v63  ;;  %v492_v30 = vpop.permute.xlu0 %491 }
 0x12c   : > { %v1003_v46 = vmul.f32 %v3125_v31, %v458_v20  ;;  %v3127_v55 = vstv %s3085_s16  ;;  %v742_v51 = vadd.f32 %v737_v6, %v725_v5  ;;  %v3129_v53 = vstv %s3122_s12 }
 0x12d   : > { %v1032_v62 = vmul.f32 %v3127_v55, %v458_v20  ;;  %v1061_v54 = vmul.f32 %v3129_v53, %v458_v20  ;;  %v3130_v57 = vstv %s3088_s13  ;;  %v3131_v12 = vstv %s3089_s1 }
 0x12e   : > { %v1090_v40 = vmul.f32 %v3130_v57, %v458_v20  ;;  %v1119_v52 = vmul.f32 %v3131_v12, %v458_v20  ;;  %v421_v3 = vadd.f32 %v2375_v19, %v403_v49  ;;  %v2515_v59 = vmul.f32 %v2259_v23, %v807_v50 }
 0x12f   : > { %v891_v27 = vmul.f32 %v2264_v22, %v807_v50  ;;  %v808_v44 = vsel %vm319_vm3, 0.0, %v802_v2  ;;  %v759_v6 = vadd.f32 %v2019_v4, %v742_v51  ;;  %v3134_v5 = vstv %s3126_s2 }
 0x130   : > { %v841_v63 = vmul.f32 %v2259_v23, %v808_v44  ;;  %v892_v61 = vmul.f32 %v2264_v22, %v808_v44  ;;  %v619_v35 = vadd.f32 %v3134_v5, %v615_v0  ;;  %v438_v19 = vadd.f32 %v2040_v18, %v421_v3  ;;  %v812_v44 = vpop.permute.xlu1 %811 }
 0x131   : > { %v3135_v31 = vstv %s3128_s5  ;;  %v830_v50 = vadd.f32 %v2269_v14, %v824_v9  ;;  %v897_v2 = vrot.slane %v891_v27, 2  ;;  %v776_v4 = vadd.f32 %v771_v7, %v759_v6 }
 0x132   : > { %v1148_v49 = vmul.f32 %v3135_v31, %v458_v20  ;;  %v846_v23 = vrot.slane %v2515_v59, 1  ;;  %v3136_v55 = vstv %s3132_s17  ;;  %v498_v51 = vsel %vm332_vm4, %v492_v30, 0.0  ;;  %v810_v31 = vpop.permute.xlu0 %809 }
 0x133   : > { %v949_v22 = vmul.f32 %v3136_v55, %v619_v35  ;;  %v455_v0 = vadd.f32 %v451_v36, %v438_v19  ;;  %v848_v53 = vrot.slane %v841_v63, 1  ;;  %v899_v57 = vrot.slane %v892_v61, 2 }
 0x134   : > { %v3137_v18 = vstv %s3133_s18  ;;  %v2535_v14 = vsel %vm412_vm2, %v896_v60, %v897_v2  ;;  %v3138_v9 = vstv %s3094_s26  ;;  %v3139_v7 = vstv %s3095_s24 }
 0x135   : > { %v978_v20 = vmul.f32 %v3137_v18, %v619_v35  ;;  %v1007_v12 = vmul.f32 %v3138_v9, %v619_v35  ;;  %v1036_v3 = vmul.f32 %v3139_v7, %v619_v35  ;;  %v3140_v27 = vstv %s2156_s8 }
 0x136   : > { %v1065_v59 = vmul.f32 %v3140_v27, %v619_v35  ;;  %v3141_v30 = vstv %s3081_s28  ;;  %v3142_v6 = vstv %s3096_s14  ;;  %v3143_v61 = vstv %s2160_s9  ;;  %s3151_s28 = sld [smem:[#allocation56_spill]] }
 0x137   : > { %v459_v36 = vadd.f32 %v3141_v30, %v455_v0  ;;  %v1094_v63 = vmul.f32 %v3142_v6, %v619_v35  ;;  %v1123_v5 = vmul.f32 %v3143_v61, %v619_v35  ;;  %v3144_v19 = vstv %s3097_s23 }
 0x138   : > { %v1152_v60 = vmul.f32 %v3144_v19, %v619_v35  ;;  %v553_v55 = vmul.f32 %v2222_v56, %v498_v51  ;;  %v604_v18 = vmul.f32 %v2228_v11, %v498_v51  ;;  %v2553_v9 = vadd.f32 %v949_v22, %v945_v29 }
 0x139   : > { %v2555_v7 = vadd.f32 %v978_v20, %v974_v47  ;;  %v3145_v27 = vstv %s3119_s25  ;;  %v3146_v0 = vstv %s3083_s30  ;;  %v849_v6 = vsel %vm360_vm1, %v846_v23, %v848_v53  ;;  %s2645_s30 = sld [smem:[#allocation9 + $0x1b]] }
 0x13a   : > { %v2559_v48 = vmul.f32 %v3145_v27, %v459_v36  ;;  %v2563_v30 = vmul.f32 %v3146_v0, %v459_v36  ;;  %v2567_v35 = vsel %vm412_vm2, %v897_v2, %v899_v57  ;;  %v3147_v56 = vstv %s3084_s19  ;;  %s2649_s19 = sld [smem:[#allocation9 + $0x1f]] }
 0x13b   : > { %v2571_v61 = vmul.f32 %v3147_v56, %v459_v36  ;;  %v3148_v11 = vstv %s3085_s16  ;;  %v3149_v47 = vstv %s3122_s12  ;;  %v3150_v51 = vstv %s3088_s13  ;;  %s2641_s13 = sld [smem:[#allocation9 + $0x17]] }
 0x13c   : > { %v2575_v29 = vmul.f32 %v3148_v11, %v459_v36  ;;  %v2579_v22 = vmul.f32 %v3149_v47, %v459_v36  ;;  %v2583_v20 = vmul.f32 %v3150_v51, %v459_v36  ;;  %v560_v19 = vrot.slane %v553_v55, 1  ;;  %v814_v47 = vpop.permute.xlu1 %813  ;;  %s2658_s16 = sld [smem:[#allocation10]] }
 0x13d   : > { %v611_v27 = vrot.slane %v604_v18, 2  ;;  %v2585_v53 = vadd.f32 %v1007_v12, %v1003_v46  ;;  %v2587_v0 = vadd.f32 %v1036_v3, %v1032_v62  ;;  %v2589_v2 = vadd.f32 %v1065_v59, %v1061_v54  ;;  %s2679_s25 = sld [smem:[#allocation10 + $0x2]] }
 0x13e   : > { %v2591_v57 = vadd.f32 %v1094_v63, %v1090_v40  ;;  %v2593_v56 = vadd.f32 %v1123_v5, %v1119_v52  ;;  %v2595_v11 = vadd.f32 %v1152_v60, %v1148_v49  ;;  %v3152_v42 = vstv %s3089_s1  ;;  %v653_v40 = vpop.permute.xlu0 %652  ;;  %s2663_s1 = sld [smem:[#allocation10 + $0x1]] }
 0x13f   : > { %v2599_v51 = vmul.f32 %v3152_v42, %v459_v36  ;;  %v3153_v55 = vstv %s3128_s5  ;;  %v3154_v46 = vrot.slane %v2386_v32, 1  ;;  %v819_v54 = vsel %vm332_vm4, %v812_v44, 0.0 }
 0x140   : > { %v2603_v39 = vmul.f32 %v3153_v55, %v459_v36  ;;  %v612_v49 = vsel %vm412_vm2, %v609_v16, %v611_v27  ;;  %v3155_v12 = vstv %s3151_s28  ;;  %v874_v3 = vmul.f32 %v2297_v37, %v819_v54 }
 0x141   : > { %v561_v62 = vsel %vm360_vm1, %v3154_v46, %v560_v19  ;;  %v834_v42 = vmul.f32 %v3155_v12, %v819_v54  ;;  %v2617_v59 = vmul.f32 %v2300_v38, %v819_v54  ;;  %v847_v32 = vsel %vm360_vm1, %v845_v13, %v846_v23 }
 0x142   : > { %v565_v52 = vadd.f32 %v561_v62, %v2404_v43  ;;  %v818_v44 = vsel %vm332_vm4, %v810_v31, 0.0  ;;  %v820_v36 = vsel %vm332_vm4, %v814_v47, 0.0  ;;  %v3156_v63 = vstv %s2170_s21 }
 0x143   : > { %v836_v26 = vadd.f32 %v834_v42, %v830_v50  ;;  %v780_v16 = vadd.f32 %v3156_v63, %v776_v4  ;;  %v659_v5 = vsel %vm332_vm4, %v653_v40, 0.0  ;;  %v3157_v60 = vmov %v3155_v12 }
 0x144   : > { %v582_v43 = vadd.f32 %v2370_v41, %v565_v52  ;;  %v833_v18 = vmul.f32 %v3157_v60, %v818_v44  ;;  %v873_v19 = vmul.f32 %v2297_v37, %v818_v44  ;;  %v2632_v1 = vmul.f32 %v2300_v38, %v818_v44 }
 0x145   : > { %v875_v13 = vmul.f32 %v2297_v37, %v820_v36  ;;  %v853_v31 = vadd.f32 %v849_v6, %v836_v26  ;;  %v880_v27 = vrot.slane %v874_v3, 1  ;;  %v2637_v41 = vmul.f32 %v2300_v38, %v820_v36 }
 0x146   : > { %v599_v23 = vadd.f32 %v2050_v15, %v582_v43  ;;  %v931_v50 = vrot.slane %v2617_v59, 2  ;;  %v835_v4 = vadd.f32 %v833_v18, %v2461_v28  ;;  %v879_v47 = vrot.slane %v873_v19, 1 }
 0x147   : > { %v882_v55 = vrot.slane %v875_v13, 1  ;;  %v870_v37 = vadd.f32 %v2060_v33, %v853_v31  ;;  %v930_v15 = vrot.slane %v2632_v1, 2  ;;  %v3158_v38 = vstv %s2173_s22 }
 0x148   : > { %v616_v46 = vadd.f32 %v612_v49, %v599_v23  ;;  %v955_v6 = vmul.f32 %v3158_v38, %v780_v16  ;;  %v852_v62 = vadd.f32 %v847_v32, %v835_v4  ;;  %v933_v33 = vrot.slane %v2637_v41, 2 }
 0x149   : > { %v883_v28 = vsel %vm360_vm1, %v880_v27, %v882_v55  ;;  %v3159_v54 = vstv %s2176_s10  ;;  %v3160_v52 = vstv %s3126_s2  ;;  %v881_v12 = vsel %vm360_vm1, %v879_v47, %v880_v27 }
 0x14a   : > { %v984_v40 = vmul.f32 %v3159_v54, %v780_v16  ;;  %v620_v49 = vadd.f32 %v3160_v52, %v616_v46  ;;  %v887_v42 = vadd.f32 %v883_v28, %v870_v37  ;;  %v3161_v3 = vstv %s2179_s20 }
 0x14b   : > { %v1013_v32 = vmul.f32 %v3161_v3, %v780_v16  ;;  %v869_v44 = vadd.f32 %v2065_v34, %v852_v62  ;;  %v3162_v36 = vstv %s2191_s7  ;;  %v3163_v26 = vstv %s2205_s11 }
 0x14c   : > { %v1042_v43 = vmul.f32 %v3162_v36, %v780_v16  ;;  %v1071_v63 = vmul.f32 %v3163_v26, %v780_v16  ;;  %v3164_v60 = vstv %s2215_s15  ;;  %v3165_v19 = vstv %s3132_s17  ;;  %s2689_s17 = sld [smem:[#allocation10 + $0x3]] }
 0x14d   : > { %v1100_v18 = vmul.f32 %v3164_v60, %v780_v16  ;;  %v950_v1 = vmul.f32 %v3165_v19, %v620_v49  ;;  %v3166_v13 = vstv %s3133_s18  ;;  %v3167_v31 = vstv %s3094_s26  ;;  %s2703_s18 = sld [smem:[#allocation10 + $0x4]] }
 0x14e   : > { %v979_v23 = vmul.f32 %v3166_v13, %v620_v49  ;;  %v1008_v27 = vmul.f32 %v3167_v31, %v620_v49  ;;  %v3168_v41 = vstv %s3095_s24  ;;  %v3169_v47 = vstv %s2156_s8  ;;  %s2722_s8 = sld [smem:[#allocation10 + $0x6]] }
 0x14f   : > { %v1037_v4 = vmul.f32 %v3168_v41, %v620_v49  ;;  %v1066_v34 = vmul.f32 %v3169_v47, %v620_v49  ;;  %v3170_v55 = vstv %s3096_s14  ;;  %v3171_v37 = vstv %s2160_s9  ;;  %s2717_s9 = sld [smem:[#allocation10 + $0x5]] }
 0x150   : > { %v1095_v46 = vmul.f32 %v3170_v55, %v620_v49  ;;  %v1124_v38 = vmul.f32 %v3171_v37, %v620_v49  ;;  %v3172_v62 = vstv %s3097_s23  ;;  %v2692_v54 = vadd.f32 %v950_v1, %v2559_v48  ;;  %s2726_s14 = sld [smem:[#allocation10 + $0x7]] }
 0x151   : > { %v1153_v28 = vmul.f32 %v3172_v62, %v620_v49  ;;  %v2695_v52 = vadd.f32 %v979_v23, %v2563_v30  ;;  %v2698_v3 = vadd.f32 %v1008_v27, %v2571_v61  ;;  %v2701_v36 = vadd.f32 %v1037_v4, %v2575_v29  ;;  %s3177_s26 = sld [smem:[#allocation40_spill]] }
 0x152   : > { %v2706_v26 = vadd.f32 %v1066_v34, %v2579_v22  ;;  %v2709_v49 = vadd.f32 %v1095_v46, %v2583_v20  ;;  %v2712_v48 = vadd.f32 %v1124_v38, %v2599_v51  ;;  %v886_v61 = vadd.f32 %v881_v12, %v869_v44  ;;  %s3178_s24 = sld [smem:[#allocation27_spill]] }
 0x153   : > { %v2715_v30 = vadd.f32 %v1153_v28, %v2603_v39  ;;  %v904_v29 = vadd.f32 %v2567_v35, %v887_v42  ;;  %v3173_v60 = vstv %s3100_s0  ;;  %v3174_v22 = vstv %s3103_s4  ;;  %s3179_s23 = sld [smem:[#allocation42_spill]] }
 0x154   : > { %v1129_v19 = vmul.f32 %v3173_v60, %v780_v16  ;;  %v1158_v20 = vmul.f32 %v3174_v22, %v780_v16  ;;  %v714_v51 = vmul.f32 %v2247_v17, %v659_v5  ;;  %v765_v39 = vmul.f32 %v2252_v21, %v659_v5 }
 0x155   : > { %v957_v1 = vadd.f32 %v955_v6, %v2553_v9  ;;  %v986_v13 = vadd.f32 %v984_v40, %v2555_v7  ;;  %v903_v12 = vadd.f32 %v2535_v14, %v886_v61  ;;  %v921_v35 = vadd.f32 %v2093_v25, %v904_v29  ;;  %v3175_v9 = vld [vmem:[#allocation30_spill] sm:$0xff] }
 0x156   : > { %v1015_v42 = vadd.f32 %v1013_v32, %v2585_v53  ;;  %v1044_v44 = vadd.f32 %v1042_v43, %v2587_v0  ;;  %v1105_v16 = vstv %s2641_s13  ;;  %v721_v23 = vrot.slane %v714_v51, 1 }
 0x157   : > { %v1073_v17 = vadd.f32 %v1071_v63, %v2589_v2  ;;  %v1102_v21 = vadd.f32 %v1100_v18, %v2591_v57  ;;  %v920_v7 = vadd.f32 %v3175_v9, %v903_v12  ;;  %v1134_v14 = vstv %s2645_s30 }
 0x158   : > { %v1131_v25 = vadd.f32 %v1129_v19, %v2593_v56  ;;  %v1160_v53 = vadd.f32 %v1158_v20, %v2595_v11  ;;  %v738_v0 = vrot.slane %v2443_v58, 2  ;;  %v932_v2 = vsel %vm412_vm2, %v930_v15, %v931_v50  ;;  %s1319_s12 = sshll.u32 %s3178_s24, 7 }
 0x159   : > { %v3176_v57 = vrot.slane %v2466_v8, 1  ;;  %v772_v6 = vrot.slane %v765_v39, 2  ;;  %v937_v40 = vadd.f32 %v932_v2, %v920_v7  ;;  %v1163_v56 = vstv %s2649_s19 }
 0x15a   : > { %v934_v58 = vsel %vm412_vm2, %v931_v50, %v933_v33  ;;  %v966_v11 = vstv %s2658_s16  ;;  %v995_v32 = vstv %s2663_s1  ;;  %v1024_v8 = vstv %s2679_s25 }
 0x15b   : > { %v722_v5 = vsel %vm360_vm1, %v3176_v57, %v721_v23  ;;  %v938_v15 = vadd.f32 %v934_v58, %v921_v35  ;;  %v1053_v43 = vstv %s2689_s17  ;;  %v3180_v63 = vstv %s3102_s3  ;;  %s2801_s3 = scalar_lea.vmem [#allocation12], %s1319_s12 }
 0x15c   : > { %v941_v18 = vadd.f32 %v3180_v63, %v937_v40  ;;  %v1082_v31 = vstv %s2703_s18  ;;  %v1111_v27 = vstv %s2717_s9  ;;  %v726_v59 = vadd.f32 %v722_v5, %v2499_v10 }
 0x15d   : > { %v3181_v50 = vrot.slane %v2409_v24, 2  ;;  %v1140_v41 = vstv %s2722_s8  ;;  %v1169_v4 = vstv %s2726_s14  ;;  %v3182_v47 = vrot.slane %v2469_v45, 2 }
 0x15e   : > { %v3183_v55 = vstv %s2261_s6  ;;  %v3184_v37 = vstv %s2271_s29  ;;  %v3185_v62 = vstv %s2277_s27  ;;  %v3186_v61 = vstv %s3177_s26  ;;  %s3199_s6 = sld [smem:[#allocation22_spill]]  ;;  %s1176_s29 = scalar_lea.sflag [#allocation4], %s3178_s24 }
 0x15f   : > { %v739_v33 = vsel %vm412_vm2, %v3181_v50, %v738_v0  ;;  %v773_v34 = vsel %vm412_vm2, %v3182_v47, %v772_v6  ;;  %v961_v46 = vmul.f32 %v3183_v55, %v941_v18  ;;  %v990_v38 = vmul.f32 %v3184_v37, %v941_v18  ;;  %v3189_v0 = vld [vmem:[#allocation33_spill] sm:$0xff] }
 0x160   : > { %v1019_v28 = vmul.f32 %v3185_v62, %v941_v18  ;;  %v1048_v29 = vmul.f32 %v3186_v61, %v941_v18  ;;  %v3187_v24 = vmov %v3180_v63  ;;  %v3188_v60 = vstv %s3179_s23 }
 0x161   : > { %v942_v10 = vadd.f32 %v3187_v24, %v938_v15  ;;  %v1077_v19 = vmul.f32 %v3188_v60, %v941_v18  ;;  %v1106_v45 = vmul.f32 %v1105_v16, %v941_v18  ;;  %v1135_v22 = vmul.f32 %v1134_v14, %v941_v18 }
 0x162   : > { %v1164_v20 = vmul.f32 %v1163_v56, %v941_v18  ;;  %v743_v51 = vadd.f32 %v739_v33, %v726_v59  ;;  %v963_v39 = vadd.f32 %v961_v46, %v957_v1  ;;  %v992_v12 = vadd.f32 %v990_v38, %v986_v13 }
 0x163   : > { %v1021_v35 = vadd.f32 %v1019_v28, %v1015_v42  ;;  %v1050_v23 = vadd.f32 %v1048_v29, %v1044_v44  ;;  %v1079_v9 = vadd.f32 %v1077_v19, %v1073_v17  ;;  %v1108_v7 = vadd.f32 %v1106_v45, %v1102_v21 }
 0x164   : > { %v760_v2 = vadd.f32 %v3189_v0, %v743_v51  ;;  %v967_v57 = vadd.f32 %v966_v11, %v963_v39  ;;  %v996_v5 = vadd.f32 %v995_v32, %v992_v12  ;;  %v1137_v6 = vadd.f32 %v1135_v22, %v1131_v25 }
 0x165   : > { %v1025_v40 = vadd.f32 %v1024_v8, %v1021_v35  ;;  %v1054_v1 = vadd.f32 %v1053_v43, %v1050_v23  ;;  %v1083_v13 = vadd.f32 %v1082_v31, %v1079_v9  ;;  %v1112_v42 = vadd.f32 %v1111_v27, %v1108_v7 }
 0x166   : > { %v777_v44 = vadd.f32 %v773_v34, %v760_v2  ;;  %970 = vst.msk [vmem:[%s2801_s3] sm:$0xff] %vm969_vm5, %v967_v57  ;;  %1372 = vst.msk [vmem:[%s2801_s3 + $0x10] sm:$0xff] %vm969_vm5, %v996_v5  ;;  %v1141_v17 = vadd.f32 %v1140_v41, %v1137_v6  ;;  %v1166_v21 = vadd.f32 %v1164_v20, %v1160_v53  ;;  %v3190_v25 = vmov %v3183_v55 }
 0x167   : > { %v962_v58 = vmul.f32 %v3190_v25, %v942_v10  ;;  %v3191_v15 = vmov %v3184_v37  ;;  %1379 = vst.msk [vmem:[%s2801_s3 + $0x20] sm:$0xff] %vm969_vm5, %v1025_v40  ;;  %1386 = vst.msk [vmem:[%s2801_s3 + $0x30] sm:$0xff] %vm969_vm5, %v1054_v1  ;;  %v3192_v18 = vmov %v3185_v62  ;;  %v3193_v59 = vmov %v3186_v61 }
 0x168   : > { %v991_v63 = vmul.f32 %v3191_v15, %v942_v10  ;;  %1393 = vst.msk [vmem:[%s2801_s3 + $0x40] sm:$0xff] %vm969_vm5, %v1083_v13  ;;  %1400 = vst.msk [vmem:[%s2801_s3 + $0x50] sm:$0xff] %vm969_vm5, %v1112_v42  ;;  %v1020_v53 = vmul.f32 %v3192_v18, %v942_v10  ;;  %v1049_v50 = vmul.f32 %v3193_v59, %v942_v10  ;;  %v3194_v33 = vstv %s2170_s21  ;;  %s1189_s21 = sshll.u32 %s2801_s3, 4  ;;  %s2878_s21 = int_to_ptr.vmem [resolvable:$true] %s1189_s21 }
 0x169   : > { %v781_v47 = vadd.f32 %v3194_v33, %v777_v44  ;;  %1407 = vst.msk [vmem:[%s2801_s3 + $0x60] sm:$0xff] %vm969_vm5, %v1141_v17  ;;  %v1170_v34 = vadd.f32 %v1169_v4, %v1166_v21  ;;  %v3195_v55 = vmov %v3188_v60  ;;  %v1107_v37 = vmul.f32 %v1105_v16, %v942_v10 }
 0x16a   : > { %v1078_v46 = vmul.f32 %v3195_v55, %v942_v10  ;;  %v1136_v38 = vmul.f32 %v1134_v14, %v942_v10  ;;  %v1165_v62 = vmul.f32 %v1163_v56, %v942_v10  ;;  %v3196_v28 = vstv %s2173_s22 }
 0x16b   : > { %v956_v61 = vmul.f32 %v3196_v28, %v781_v47  ;;  %v3197_v29 = vstv %s2176_s10  ;;  %v3198_v60 = vstv %s2179_s20  ;;  %v3200_v45 = vstv %s2191_s7  ;;  %1414 = vst.msk [vmem:[%s2801_s3 + $0x70] sm:$0xff] %vm969_vm5, %v1170_v34  ;;  %s1422_s20 = sshll.u32 %s3199_s6, 11  ;;  %s3205_s7 = sld [smem:[#allocation62_spill]] }
 0x16c   : > { %v985_v24 = vmul.f32 %v3197_v29, %v781_v47  ;;  %v1014_v19 = vmul.f32 %v3198_v60, %v781_v47  ;;  %v1043_v22 = vmul.f32 %v3200_v45, %v781_v47  ;;  %v3201_v20 = vstv %s2205_s11 }
 0x16d   : > { %v1072_v51 = vmul.f32 %v3201_v20, %v781_v47  ;;  %v3202_v39 = vstv %s2215_s15  ;;  %v3203_v16 = vstv %s3100_s0  ;;  %v3204_v14 = vstv %s3103_s4  ;;  %s3206_s15 = sld [smem:[#allocation26_spill]]  ;;  %s1604_s0 = scalar_lea.vmem %s2878_s21, 2048 }
 0x16e   : > { %v1101_v12 = vmul.f32 %v3202_v39, %v781_v47  ;;  %v1130_v35 = vmul.f32 %v3203_v16, %v781_v47  ;;  %v1159_v56 = vmul.f32 %v3204_v14, %v781_v47  ;;  %v958_v10 = vadd.f32 %v956_v61, %v2692_v54  ;;  %p1605_p2 = scmp.ne.s32.totalorder %s2878_s21, %s1604_s0  ;;  %s1691_s4 = smov [#allocation12]  }
 0x16f   : > { %v987_v23 = vadd.f32 %v985_v24, %v2695_v52  ;;  %v1016_v9 = vadd.f32 %v1014_v19, %v2698_v3  ;;  %v1045_v7 = vadd.f32 %v1043_v22, %v2701_v36  ;;  %v1074_v0 = vadd.f32 %v1072_v51, %v2706_v26  ;;  %s1608_s27 = sshll.u32 %s1691_s4, 4  ;;  %s1609_s27 = int_to_ptr.vmem [resolvable:$false] %s1608_s27 }
 0x170   : > { %v1103_v2 = vadd.f32 %v1101_v12, %v2709_v49  ;;  %v1132_v57 = vadd.f32 %v1130_v35, %v2712_v48  ;;  %v1161_v5 = vadd.f32 %v1159_v56, %v2715_v30  ;;  %v964_v54 = vadd.f32 %v962_v58, %v958_v10  ;;  %s1610_s2 = scalar_lea.vmem %s1609_s27, 4096  ;;  %p1611_p7 = scmp.lt.s32.totalorder %s2878_s21, %s1609_s27 }
 0x171   : > { %v993_v52 = vadd.f32 %v991_v63, %v987_v23  ;;  %v1022_v3 = vadd.f32 %v1020_v53, %v1016_v9  ;;  %v1051_v36 = vadd.f32 %v1049_v50, %v1045_v7  ;;  %v1080_v26 = vadd.f32 %v1078_v46, %v1074_v0  ;;  %s2876_s11 = scalar_lea.hbm %s3205_s7, %s1422_s20  ;;  %p1612_p12 = scmp.lt.s32.totalorder %s1610_s2, %s1604_s0 }
 0x172   : > { %v1109_v49 = vadd.f32 %v1107_v37, %v1103_v2  ;;  %v1138_v6 = vadd.f32 %v1136_v38, %v1132_v57  ;;  %v1167_v48 = vadd.f32 %v1165_v62, %v1161_v5  ;;  %v968_v30 = vadd.f32 %v966_v11, %v964_v54 }
 0x173   : > { %v997_v40 = vadd.f32 %v995_v32, %v993_v52  ;;  %v1026_v1 = vadd.f32 %v1024_v8, %v1022_v3  ;;  %v1055_v13 = vadd.f32 %v1053_v43, %v1051_v36  ;;  %v1084_v11 = vadd.f32 %v1082_v31, %v1080_v26  ;;  %p3207_p5 = scmp.ne.s32.totalorder %s3206_s15, 0  ;;  %p1613_p10 = por %p1612_p12, %p1611_p7 }
 0x174   : > { %v1113_v32 = vadd.f32 %v1111_v27, %v1109_v49  ;;  %v1142_v42 = vadd.f32 %v1140_v41, %v1138_v6  ;;  %v1171_v8 = vadd.f32 %v1169_v4, %v1167_v48  ;;  %971 = vst.msk [vmem:[%s2801_s3 + $0x8] sm:$0xff] %vm969_vm5, %v968_v30 }
 0x175   : > { %1373 = vst.msk [vmem:[%s2801_s3 + $0x18] sm:$0xff] %vm969_vm5, %v997_v40  ;;  %1380 = vst.msk [vmem:[%s2801_s3 + $0x28] sm:$0xff] %vm969_vm5, %v1026_v1  ;;  %p1606_p4 = pnand %p1605_p2, %p3207_p5 }
 0x176   : > { %1387 = vst.msk [vmem:[%s2801_s3 + $0x38] sm:$0xff] %vm969_vm5, %v1055_v13  ;;  %1394 = vst.msk [vmem:[%s2801_s3 + $0x48] sm:$0xff] %vm969_vm5, %v1084_v11 }
 0x177   : > { %1401 = vst.msk [vmem:[%s2801_s3 + $0x58] sm:$0xff] %vm969_vm5, %v1113_v32  ;;  %1408 = vst.msk [vmem:[%s2801_s3 + $0x68] sm:$0xff] %vm969_vm5, %v1142_v42  ;;  %p1607_p8 = pneg %p1606_p4 }
 0x178   : > { %1415 = vst.msk [vmem:[%s2801_s3 + $0x78] sm:$0xff] %vm969_vm5, %v1171_v8 }
 0x179   : > { %p1614_p6 = pnand %p1613_p10, %p1607_p8 }
 0x17b   : > { %1617 = shalt.err (!%p1614_p6)
}
 0x17c   : > { %s1618_s5 = scalar_lea.hbm %s2876_s11, 2048  ;;  %s1622_s30 = scalar_lea.hbm %s3205_s7, 4096 }
 0x17d   : > { %p1619_p11 = scmp.ne.s32.totalorder %s2876_s11, %s1618_s5  ;;  %p1623_p3 = scmp.lt.s32.totalorder %s2876_s11, %s3205_s7 }
 0x17e   : > { %p1624_p13 = scmp.lt.s32.totalorder %s1622_s30, %s1618_s5 }
 0x17f   : > { %p1620_p0 = pnand %p1619_p11, %p3207_p5 }
 0x180   : > { %p1625_p1 = por %p1624_p13, %p1623_p3 }
 0x181   : > { %p1621_p9 = pneg %p1620_p0 }
 0x183   : > { %p1626_p2 = pnand %p1625_p1, %p1621_p9 }
 0x185   : > { %1629 = shalt.err (!%p1626_p2)
}
 0x186   : > { %s1692_s1 = smov 128   ;;  %s1693_s25 = smov 8  }
 0x187   : > { %1441 = dma.vmem_to_hbm [thread:$0]  (%p3207_p5), %s2878_s21, 2048, %s2876_s11, %s1176_s29, %s1692_s1, %s1692_s1, %s1693_s25  }
 0x188 PF: > { %s3208_s17 = sld [smem:[#allocation18_spill]] }
 0x189   : > { %s3209_s18 = sld [smem:[#allocation23_spill]] }
 0x18a   : > { %s3210_s9 = sld [smem:[#allocation21_spill]] }
 0x18e   : > { %s1204_s8 = sand.u32 1, %s3208_s17  }
 0x18f   : > { %p3211_p4 = scmp.ne.s32.totalorder %s3209_s18, 0  ;;  %s1205_s14 = scalar_lea.sflag [#allocation4], %s1204_s8 }
 0x190   : > { %p3212_p8 = scmp.ge.s32.totalorder %s3210_s9, 2 }
 0x192   : > { %p1461_p7 = pnand %p3212_p8, %p3211_p4 }
 0x194   : > { %p1462_p12 = pneg %p1461_p7 }
 0x196   : > { %1663 = dma.done.wait (%p1462_p12), %s1205_s14, 2048  }
 0x197   : > { %1665 = vsyncadd (%p1462_p12), %s1205_s14, 4294965248  ;;  %s3213_s21 = sld [smem:[#allocation24_spill]] }
 0x198   : > { %s3214_s18 = sld [smem:[#allocation19_spill]] }
 0x199   : > { %s3215_s19 = sld [smem:[#allocation20_spill]] }
 0x19a   : > { %s3216_s20 = sld [smem:[#allocation25_spill]] }
 0x19d   : > { %p21_p10 = scmp.ge.s32.totalorder %s3213_s21, 4  }
 0x19f   :  { %23 = sbr.rel (!%p21_p10) target bundleno = 15 (0xf), region = 112 }
 0x1a4   :  { %1210 = vsyncpa [#allocation3], 1 }
 0x1a5   :  { %1212 = vsyncpa [#allocation3 + $0x1], 1 }
 0x1a6   :  { %1213 = vsyncpa [#allocation4], 1 }
 0x1a7   :  { %1215 = vsyncpa [#allocation4 + $0x1], 1 }
 0x1a8   :  { %1216 = vsyncpa [#allocation5], 1 }
 0x1a9   :  { %1218 = vsyncpa [#allocation5 + $0x1], 1 }
 0x1aa   :  { %1219 = vsyncpa [#allocation8], 1 }
 0x1ab   :  { %1220 = vsyncpa [#allocation11], 1 }

</bundles_post_ra>
